<compile_context>
chip_gen: v7x
topology: tpu7x:2x2x1
jax: 0.10.0
libtpu: 0.0.40
codegen_flags: <defaults>
</compile_context>

<pallas_src>
import jax
import jax.numpy as jnp
from jax.experimental import pallas as pl
from jax.experimental.pallas import tpu as pltpu

_ALPHA = 0.1
_INV_ALPHA = 1.0 / _ALPHA
_LANE = 128


def _round_up(v, m):
    return (v + m - 1) // m * m


def _celu(x):
    # torch.nn.CELU(alpha=0.1). fp32 (v5e has no bf16 VPU/EUP); the exp lands
    # on the otherwise-idle EUP slot, so CELU is effectively free here.
    return jnp.maximum(x, 0.0) + jnp.minimum(
        0.0, _ALPHA * (jnp.exp(x * _INV_ALPHA) - 1.0))


def _pairwise_kernel(
    x_ref, aev_ref,
    w1x_ref,                      # (D_in, 2*H_pad) bf16 = [ew1 | lw1_x] fused
    eb1_ref, lb1_ref,             # (1, H_pad) fp32
    ew2_ref, eb2_ref,             # (H_pad, D_aev) bf16 / (1, D_aev) fp32
    lw1a_ref,                     # (D_aev, H_pad) bf16
    lw2_ref, lb2_ref,             # (H_pad, D_in) bf16 / (1, D_in) fp32
    out_ref,                      # (T, D_in) fp32
):
    h_pad = eb1_ref.shape[1]

    x_f32 = x_ref[...]                                   # (T, D_in) fp32
    x_bf = x_f32.astype(jnp.bfloat16)
    aev = aev_ref[...].astype(jnp.float32)               # bf16 in HBM -> fp32

    # ---- single fused x matmul feeding both MLPs ------------------------------
    xw = jnp.dot(x_bf, w1x_ref[...], preferred_element_type=jnp.float32)  # (T, 2*H_pad)
    h_pre = xw[:, :h_pad] + eb1_ref[...]   # embedding first-layer pre-activation
    gx_pre = xw[:, h_pad:]                 # latent first-layer x contribution

    # ---- embedding(x): CELU -> Linear (bf16 ops, fp32 acc) --------------------
    h = _celu(h_pre)
    w = jnp.dot(h.astype(jnp.bfloat16), ew2_ref[...],
                preferred_element_type=jnp.float32) + eb2_ref[...]        # (T, D_aev)

    # ---- aev *= embedding weights (fp32 elementwise) --------------------------
    aev_scaled = (aev * w).astype(jnp.bfloat16)

    # ---- latent(column_stack([x, aev])): concat fused as split matmul ---------
    g = _celu(gx_pre
              + jnp.dot(aev_scaled, lw1a_ref[...], preferred_element_type=jnp.float32)
              + lb1_ref[...])
    y = jnp.dot(g.astype(jnp.bfloat16), lw2_ref[...],
                preferred_element_type=jnp.float32) + lb2_ref[...]        # (T, D_in)

    # ---- exact fp32 residual (VPU add), un-padded lane-width store ------------
    out_ref[...] = (x_f32 + y).astype(out_ref.dtype)


def pairwise_transform(x, aev, params, *, tile_n=1024):
    """x: (N, D_in) fp32, aev: (N, D_aev) fp32 or bf16, params from make_params()[0]."""
    n, d_in = x.shape
    d_aev = aev.shape[1]

    # aev is the dominant HBM stream: carry it as bf16. Callers that can
    # produce aev directly in bf16 should do so and skip this cast pass.
    if aev.dtype != jnp.bfloat16:
        aev = aev.astype(jnp.bfloat16)

    # At least 2 grid steps so the "parallel" axis shards across both v7x TCs;
    # rows-per-tile kept a multiple of 8 (sublane).
    tile_n = max(8, min(tile_n, _round_up(pl.cdiv(n, 2), 8)))
    grid = (pl.cdiv(n, tile_n),)

    def tiled(shape):
        return pl.BlockSpec(shape, lambda i: (i, 0))

    def resident(arr):
        # Constant index_map: DMA'd once, stays VMEM-resident across the grid.
        # (Weights/biases are only tens of KiB, so double-buffering them is a
        # negligible cost; left at the default buffering.)
        return pl.BlockSpec(arr.shape, lambda i: (0, 0))

    operands = (
        x, aev,
        params["w1x"], params["eb1"], params["lb1"],
        params["ew2"], params["eb2"],
        params["lw1a"],
        params["lw2"], params["lb2"],
    )
    in_specs = [tiled((tile_n, d_in)), tiled((tile_n, d_aev))]
    in_specs += [resident(p) for p in operands[2:]]
    out_spec = pl.BlockSpec((tile_n, d_in), lambda i: (i, 0))

    return pl.pallas_call(
        _pairwise_kernel,
        out_shape=jax.ShapeDtypeStruct((n, d_in), x.dtype),
        grid=grid,
        in_specs=in_specs,
        out_specs=out_spec,
        compiler_params=pltpu.CompilerParams(
            dimension_semantics=("parallel",),
            vmem_limit_bytes=32 << 20,
        ),
    )(*operands)


def make_params(key, d_in, d_aev, hidden, w_dtype=jnp.bfloat16):
    """Deterministic synthetic parameters.

    Returns (kernel_params, torch_params):
      torch_params  : fp32, PyTorch Linear layout (out, in) -- for the reference.
      kernel_params : transposed to (in, out); the hidden dim is zero-padded to
        a multiple of 128 lanes (exact: CELU(0)==0); ew1 and the x-half of lw1
        are fused into one (d_in, 2*h_pad) weight; matmul weights bf16, biases
        fp32 (shaped (1, cols) for broadcasting).
    """
    ks = jax.random.split(key, 4)

    def lin_w(k, fan_in, fan_out, scale=0.1):
        return scale * jax.random.normal(k, (fan_out, fan_in), jnp.float32)  # (out, in)

    ew1 = lin_w(ks[0], d_in, hidden)
    eb1 = 0.01 * jnp.ones((hidden,), jnp.float32)
    ew2 = lin_w(ks[1], hidden, d_aev)
    eb2 = 0.01 * jnp.ones((d_aev,), jnp.float32)
    lw1 = lin_w(ks[2], d_in + d_aev, hidden)
    lb1 = 0.01 * jnp.ones((hidden,), jnp.float32)
    lw2 = lin_w(ks[3], hidden, d_in)
    lb2 = 0.01 * jnp.ones((d_in,), jnp.float32)

    torch_params = {"ew1": ew1, "eb1": eb1, "ew2": ew2, "eb2": eb2,
                    "lw1": lw1, "lb1": lb1, "lw2": lw2, "lb2": lb2}

    h_pad = _round_up(hidden, _LANE)

    def pad2(a, rows, cols):
        return jnp.pad(a, ((0, rows - a.shape[0]), (0, cols - a.shape[1])))

    def pad1(a, cols):
        return jnp.pad(a, (0, cols - a.shape[0])).reshape(1, -1)

    ew1_t = pad2(ew1.T, d_in, h_pad)                 # (d_in, h_pad)
    lw1x_t = pad2(lw1[:, :d_in].T, d_in, h_pad)      # (d_in, h_pad)

    kernel_params = {
        # fused first-layer weight for x: [embedding W1 | latent W1 (x half)]
        "w1x": jnp.concatenate([ew1_t, lw1x_t], axis=1).astype(w_dtype),
        "eb1": pad1(eb1, h_pad),
        "lb1": pad1(lb1, h_pad),
        "ew2": pad2(ew2.T, h_pad, d_aev).astype(w_dtype),
        "eb2": eb2.reshape(1, -1),
        "lw1a": lw1[:, d_in:].T.astype(w_dtype),     # (d_aev, h_pad==hidden rows? no: (d_aev, hidden)) padded below
        "lw2": pad2(lw2.T, h_pad, d_in).astype(w_dtype),
        "lb2": lb2.reshape(1, -1),
    }
    # lw1a needs its hidden (column) dim padded to h_pad to match gx_pre width.
    kernel_params["lw1a"] = pad2(lw1[:, d_in:].T, d_aev, h_pad).astype(w_dtype)
    return kernel_params, torch_params


def reference_fp32(x, aev, rp):
    """Plain-JAX fp32 reference reproducing the PyTorch semantics."""
    h = _celu(x @ rp["ew1"].T + rp["eb1"])
    w = h @ rp["ew2"].T + rp["eb2"]
    aev2 = aev * w
    cat = jnp.concatenate([x, aev2], axis=1)
    g = _celu(cat @ rp["lw1"].T + rp["lb1"])
    y = g @ rp["lw2"].T + rp["lb2"]
    return x + y


def reference_kernel_math(x, aev, kp):
    """Mirrors the kernel's bf16-operand / fp32-accumulate arithmetic in plain JAX."""
    bf, f32 = jnp.bfloat16, jnp.float32
    h_pad = kp["eb1"].shape[1]
    x_bf = x.astype(bf)
    aev_w = aev.astype(bf).astype(f32)            # wrapper bf16 cast, widened in-kernel
    xw = jnp.dot(x_bf, kp["w1x"], preferred_element_type=f32)
    h = _celu(xw[:, :h_pad] + kp["eb1"])
    w = jnp.dot(h.astype(bf), kp["ew2"], preferred_element_type=f32) + kp["eb2"]
    aev_s = (aev_w * w).astype(bf)
    g = _celu(xw[:, h_pad:]
              + jnp.dot(aev_s, kp["lw1a"], preferred_element_type=f32) + kp["lb1"])
    y = jnp.dot(g.astype(bf), kp["lw2"], preferred_element_type=f32) + kp["lb2"]
    return x + y


if __name__ == "__main__":
    key = jax.random.PRNGKey(0)
    k_x, k_aev, k_p = jax.random.split(key, 3)

    # Small but representative shapes: N samples, D_in=32 features, 128-d AEV.
    N, D_IN, D_AEV, HIDDEN = 512, 32, 128, 64
    x = jax.random.normal(k_x, (N, D_IN), jnp.float32)
    aev = jax.random.normal(k_aev, (N, D_AEV), jnp.float32)
    kern_params, torch_params = make_params(k_p, D_IN, D_AEV, HIDDEN)

    # tile_n default 1024 is capped to N/2 -> 2 pipelined (and TC-shardable) steps.
    out = pairwise_transform(x, aev, kern_params)
    out = jax.block_until_ready(out)
    assert out.shape == (N, D_IN)

    # Tight check against a plain-JAX mirror of the kernel's bf16/fp32 math.
    mirror = reference_kernel_math(x, aev, kern_params)
    assert jnp.allclose(out, mirror, atol=2e-3, rtol=2e-3), "mismatch vs bf16 mirror"

    # Accuracy check against the full-fp32 PyTorch-semantics reference
    # (looser tolerance: weights/operands are bf16 on the MXU, aev carried bf16).
    ref = reference_fp32(x, aev, torch_params)
    assert jnp.allclose(out, ref, atol=5e-2, rtol=5e-2), "mismatch vs fp32 reference"

    print("KERNEL_OK")
</pallas_src>

<mosaic_0001>
module attributes {stable_mosaic.version = 11 : i64} {
  func.func @_pairwise_kernel(%arg0: i32, %arg1: memref<256x32xf32, #tpu.memory_space<vmem>>, %arg2: memref<256x128xbf16, #tpu.memory_space<vmem>>, %arg3: memref<32x256xbf16, #tpu.memory_space<vmem>>, %arg4: memref<1x128xf32, #tpu.memory_space<vmem>>, %arg5: memref<1x128xf32, #tpu.memory_space<vmem>>, %arg6: memref<128x128xbf16, #tpu.memory_space<vmem>>, %arg7: memref<1x128xf32, #tpu.memory_space<vmem>>, %arg8: memref<128x128xbf16, #tpu.memory_space<vmem>>, %arg9: memref<128x32xbf16, #tpu.memory_space<vmem>>, %arg10: memref<1x32xf32, #tpu.memory_space<vmem>>, %arg11: memref<256x32xf32, #tpu.memory_space<vmem>>) attributes {dimension_semantics = [#tpu.dimension_semantics<parallel>], iteration_bounds = array<i64: 2>, scalar_prefetch = 0 : i64, scratch_operands = 0 : i64, tpu.core_type = #tpu.core_type<tc>, window_params = [{transform_indices = @transform_0, window_bounds = array<i64: 256, 32>}, {transform_indices = @transform_1, window_bounds = array<i64: 256, 128>}, {pipeline_mode = #tpu.pipeline_mode<synchronous>, transform_indices = @transform_2, window_bounds = array<i64: 32, 256>}, {pipeline_mode = #tpu.pipeline_mode<synchronous>, transform_indices = @transform_3, window_bounds = array<i64: 1, 128>}, {pipeline_mode = #tpu.pipeline_mode<synchronous>, transform_indices = @transform_4, window_bounds = array<i64: 1, 128>}, {pipeline_mode = #tpu.pipeline_mode<synchronous>, transform_indices = @transform_5, window_bounds = array<i64: 128, 128>}, {pipeline_mode = #tpu.pipeline_mode<synchronous>, transform_indices = @transform_6, window_bounds = array<i64: 1, 128>}, {pipeline_mode = #tpu.pipeline_mode<synchronous>, transform_indices = @transform_7, window_bounds = array<i64: 128, 128>}, {pipeline_mode = #tpu.pipeline_mode<synchronous>, transform_indices = @transform_8, window_bounds = array<i64: 128, 32>}, {pipeline_mode = #tpu.pipeline_mode<synchronous>, transform_indices = @transform_9, window_bounds = array<i64: 1, 32>}, {transform_indices = @transform_10, window_bounds = array<i64: 256, 32>}]} {
    %c0 = arith.constant 0 : index
    %c0_0 = arith.constant 0 : index
    %0 = vector.load %arg1[%c0, %c0_0] : memref<256x32xf32, #tpu.memory_space<vmem>>, vector<256x32xf32>
    %1 = arith.truncf %0 : vector<256x32xf32> to vector<256x32xbf16>
    %c0_1 = arith.constant 0 : index
    %c0_2 = arith.constant 0 : index
    %2 = vector.load %arg2[%c0_1, %c0_2] : memref<256x128xbf16, #tpu.memory_space<vmem>>, vector<256x128xbf16>
    %3 = arith.extf %2 : vector<256x128xbf16> to vector<256x128xf32>
    %c0_3 = arith.constant 0 : index
    %c0_4 = arith.constant 0 : index
    %4 = vector.load %arg3[%c0_3, %c0_4] : memref<32x256xbf16, #tpu.memory_space<vmem>>, vector<32x256xbf16>
    %cst = arith.constant dense<0.000000e+00> : vector<256x256xf32>
    %5 = tpu.matmul %1, %4, %cst {dimension_numbers = #tpu.dot_dimension_numbers<[1], [0], [0], [1], [0, 0, 1, 1], [], []>} : vector<256x32xbf16>, vector<32x256xbf16>, vector<256x256xf32> -> vector<256x256xf32>
    %6 = vector.extract_strided_slice %5 {offsets = [0, 0], sizes = [256, 128], strides = [1, 1]} : vector<256x256xf32> to vector<256x128xf32>
    %c0_5 = arith.constant 0 : index
    %c0_6 = arith.constant 0 : index
    %7 = vector.load %arg4[%c0_5, %c0_6] : memref<1x128xf32, #tpu.memory_space<vmem>>, vector<1x128xf32>
    %8 = vector.broadcast %7 : vector<1x128xf32> to vector<256x128xf32>
    %9 = arith.addf %6, %8 : vector<256x128xf32>
    %10 = vector.extract_strided_slice %5 {offsets = [0, 128], sizes = [256, 128], strides = [1, 1]} : vector<256x256xf32> to vector<256x128xf32>
    %cst_7 = arith.constant 0.000000e+00 : f32
    %11 = vector.broadcast %cst_7 : f32 to vector<256x128xf32>
    %12 = arith.maximumf %9, %11 : vector<256x128xf32>
    %cst_8 = arith.constant 1.000000e+01 : f32
    %13 = vector.broadcast %cst_8 : f32 to vector<256x128xf32>
    %14 = arith.mulf %9, %13 : vector<256x128xf32>
    %15 = math.exp %14 : vector<256x128xf32>
    %cst_9 = arith.constant 1.000000e+00 : f32
    %16 = vector.broadcast %cst_9 : f32 to vector<256x128xf32>
    %17 = arith.subf %15, %16 : vector<256x128xf32>
    %cst_10 = arith.constant 1.000000e-01 : f32
    %18 = vector.broadcast %cst_10 : f32 to vector<256x128xf32>
    %19 = arith.mulf %18, %17 : vector<256x128xf32>
    %cst_11 = arith.constant 0.000000e+00 : f32
    %20 = vector.broadcast %cst_11 : f32 to vector<256x128xf32>
    %21 = arith.minimumf %20, %19 : vector<256x128xf32>
    %22 = arith.addf %12, %21 : vector<256x128xf32>
    %23 = arith.truncf %22 : vector<256x128xf32> to vector<256x128xbf16>
    %c0_12 = arith.constant 0 : index
    %c0_13 = arith.constant 0 : index
    %24 = vector.load %arg6[%c0_12, %c0_13] : memref<128x128xbf16, #tpu.memory_space<vmem>>, vector<128x128xbf16>
    %cst_14 = arith.constant dense<0.000000e+00> : vector<256x128xf32>
    %25 = tpu.matmul %23, %24, %cst_14 {dimension_numbers = #tpu.dot_dimension_numbers<[1], [0], [0], [1], [0, 0, 1, 1], [], []>} : vector<256x128xbf16>, vector<128x128xbf16>, vector<256x128xf32> -> vector<256x128xf32>
    %c0_15 = arith.constant 0 : index
    %c0_16 = arith.constant 0 : index
    %26 = vector.load %arg7[%c0_15, %c0_16] : memref<1x128xf32, #tpu.memory_space<vmem>>, vector<1x128xf32>
    %27 = vector.broadcast %26 : vector<1x128xf32> to vector<256x128xf32>
    %28 = arith.addf %25, %27 : vector<256x128xf32>
    %29 = arith.mulf %3, %28 : vector<256x128xf32>
    %30 = arith.truncf %29 : vector<256x128xf32> to vector<256x128xbf16>
    %c0_17 = arith.constant 0 : index
    %c0_18 = arith.constant 0 : index
    %31 = vector.load %arg8[%c0_17, %c0_18] : memref<128x128xbf16, #tpu.memory_space<vmem>>, vector<128x128xbf16>
    %cst_19 = arith.constant dense<0.000000e+00> : vector<256x128xf32>
    %32 = tpu.matmul %30, %31, %cst_19 {dimension_numbers = #tpu.dot_dimension_numbers<[1], [0], [0], [1], [0, 0, 1, 1], [], []>} : vector<256x128xbf16>, vector<128x128xbf16>, vector<256x128xf32> -> vector<256x128xf32>
    %33 = arith.addf %10, %32 : vector<256x128xf32>
    %c0_20 = arith.constant 0 : index
    %c0_21 = arith.constant 0 : index
    %34 = vector.load %arg5[%c0_20, %c0_21] : memref<1x128xf32, #tpu.memory_space<vmem>>, vector<1x128xf32>
    %35 = vector.broadcast %34 : vector<1x128xf32> to vector<256x128xf32>
    %36 = arith.addf %33, %35 : vector<256x128xf32>
    %cst_22 = arith.constant 0.000000e+00 : f32
    %37 = vector.broadcast %cst_22 : f32 to vector<256x128xf32>
    %38 = arith.maximumf %36, %37 : vector<256x128xf32>
    %cst_23 = arith.constant 1.000000e+01 : f32
    %39 = vector.broadcast %cst_23 : f32 to vector<256x128xf32>
    %40 = arith.mulf %36, %39 : vector<256x128xf32>
    %41 = math.exp %40 : vector<256x128xf32>
    %cst_24 = arith.constant 1.000000e+00 : f32
    %42 = vector.broadcast %cst_24 : f32 to vector<256x128xf32>
    %43 = arith.subf %41, %42 : vector<256x128xf32>
    %cst_25 = arith.constant 1.000000e-01 : f32
    %44 = vector.broadcast %cst_25 : f32 to vector<256x128xf32>
    %45 = arith.mulf %44, %43 : vector<256x128xf32>
    %cst_26 = arith.constant 0.000000e+00 : f32
    %46 = vector.broadcast %cst_26 : f32 to vector<256x128xf32>
    %47 = arith.minimumf %46, %45 : vector<256x128xf32>
    %48 = arith.addf %38, %47 : vector<256x128xf32>
    %49 = arith.truncf %48 : vector<256x128xf32> to vector<256x128xbf16>
    %c0_27 = arith.constant 0 : index
    %c0_28 = arith.constant 0 : index
    %50 = vector.load %arg9[%c0_27, %c0_28] : memref<128x32xbf16, #tpu.memory_space<vmem>>, vector<128x32xbf16>
    %cst_29 = arith.constant dense<0.000000e+00> : vector<256x32xf32>
    %51 = tpu.matmul %49, %50, %cst_29 {dimension_numbers = #tpu.dot_dimension_numbers<[1], [0], [0], [1], [0, 0, 1, 1], [], []>} : vector<256x128xbf16>, vector<128x32xbf16>, vector<256x32xf32> -> vector<256x32xf32>
    %c0_30 = arith.constant 0 : index
    %c0_31 = arith.constant 0 : index
    %52 = vector.load %arg10[%c0_30, %c0_31] : memref<1x32xf32, #tpu.memory_space<vmem>>, vector<1x32xf32>
    %53 = vector.broadcast %52 : vector<1x32xf32> to vector<256x32xf32>
    %54 = arith.addf %51, %53 : vector<256x32xf32>
    %55 = arith.addf %0, %54 : vector<256x32xf32>
    %c0_32 = arith.constant 0 : index
    %c0_33 = arith.constant 0 : index
    %56 = vector.load %arg11[%c0_32, %c0_33] : memref<256x32xf32, #tpu.memory_space<vmem>>, vector<256x32xf32>
    tpu.vector_store %arg11[%c0_32, %c0_33], %55 {strides = array<i32>} : memref<256x32xf32, #tpu.memory_space<vmem>>, vector<256x32xf32>,
    return
  }
  func.func @transform_0(%arg0: i32) -> (i32, i32) {
    %c0_i32 = arith.constant 0 : i32
    %c0_i32_0 = arith.constant 0 : i32
    return %arg0, %c0_i32 : i32, i32
  }
  func.func @transform_1(%arg0: i32) -> (i32, i32) {
    %c0_i32 = arith.constant 0 : i32
    %c0_i32_0 = arith.constant 0 : i32
    return %arg0, %c0_i32 : i32, i32
  }
  func.func @transform_2(%arg0: i32) -> (i32, i32) {
    %c0_i32 = arith.constant 0 : i32
    %c0_i32_0 = arith.constant 0 : i32
    %c0_i32_1 = arith.constant 0 : i32
    return %c0_i32, %c0_i32_0 : i32, i32
  }
  func.func @transform_3(%arg0: i32) -> (i32, i32) {
    %c0_i32 = arith.constant 0 : i32
    %c0_i32_0 = arith.constant 0 : i32
    %c0_i32_1 = arith.constant 0 : i32
    return %c0_i32, %c0_i32_0 : i32, i32
  }
  func.func @transform_4(%arg0: i32) -> (i32, i32) {
    %c0_i32 = arith.constant 0 : i32
    %c0_i32_0 = arith.constant 0 : i32
    %c0_i32_1 = arith.constant 0 : i32
    return %c0_i32, %c0_i32_0 : i32, i32
  }
  func.func @transform_5(%arg0: i32) -> (i32, i32) {
    %c0_i32 = arith.constant 0 : i32
    %c0_i32_0 = arith.constant 0 : i32
    %c0_i32_1 = arith.constant 0 : i32
    return %c0_i32, %c0_i32_0 : i32, i32
  }
  func.func @transform_6(%arg0: i32) -> (i32, i32) {
    %c0_i32 = arith.constant 0 : i32
    %c0_i32_0 = arith.constant 0 : i32
    %c0_i32_1 = arith.constant 0 : i32
    return %c0_i32, %c0_i32_0 : i32, i32
  }
  func.func @transform_7(%arg0: i32) -> (i32, i32) {
    %c0_i32 = arith.constant 0 : i32
    %c0_i32_0 = arith.constant 0 : i32
    %c0_i32_1 = arith.constant 0 : i32
    return %c0_i32, %c0_i32_0 : i32, i32
  }
  func.func @transform_8(%arg0: i32) -> (i32, i32) {
    %c0_i32 = arith.constant 0 : i32
    %c0_i32_0 = arith.constant 0 : i32
    %c0_i32_1 = arith.constant 0 : i32
    return %c0_i32, %c0_i32_0 : i32, i32
  }
  func.func @transform_9(%arg0: i32) -> (i32, i32) {
    %c0_i32 = arith.constant 0 : i32
    %c0_i32_0 = arith.constant 0 : i32
    %c0_i32_1 = arith.constant 0 : i32
    return %c0_i32, %c0_i32_0 : i32, i32
  }
  func.func @transform_10(%arg0: i32) -> (i32, i32) {
    %c0_i32 = arith.constant 0 : i32
    %c0_i32_0 = arith.constant 0 : i32
    return %arg0, %c0_i32 : i32, i32
  }
}

</mosaic_0001>

<bundles_post_ra>
// kernel: tpu_custom_call.1
= control target key start
LH: loop header
LB: loop body
LE: loop exit
PB: predicated region body
PF: predicated region fallthrough
CT: control target
= control target key end

     0   :  { %s2974_s13 = smov 0   ;;  %s3791_s0 = inlined_call_operand.vmem [shape: f32[512,32], index: 0, kind: input, shape index: {}]   ;;  %s3792_s1 = inlined_call_operand.vmem [shape: bf16[512,128], index: 1, kind: input, shape index: {}]   ;;  %s3793_s2 = inlined_call_operand.vmem [shape: bf16[32,256], index: 2, kind: input, shape index: {}]   ;;  %s3794_s3 = inlined_call_operand.vmem [shape: f32[1,128], index: 3, kind: input, shape index: {}]   ;;  %s3795_s4 = inlined_call_operand.vmem [shape: f32[1,128], index: 4, kind: input, shape index: {}]   ;;  %s3796_s5 = inlined_call_operand.vmem [shape: bf16[128,128], index: 5, kind: input, shape index: {}]   ;;  %s3797_s6 = inlined_call_operand.vmem [shape: f32[1,128], index: 6, kind: input, shape index: {}]   ;;  %s3798_s7 = inlined_call_operand.vmem [shape: bf16[128,128], index: 7, kind: input, shape index: {}]   ;;  %s3799_s8 = inlined_call_operand.vmem [shape: bf16[128,32], index: 8, kind: input, shape index: {}]   ;;  %s3800_s9 = inlined_call_operand.vmem [shape: f32[1,32], index: 9, kind: input, shape index: {}]   ;;  %s3801_s10 = inlined_call_operand.vmem [shape: f32[512,32], index: 10, kind: output, shape index: {}]  }
   0x1 LB: > { %s2287_s14 = sadd.s32 4294967295, %s2916_s13   ;;  %p2291_p0 = scmp.ge.s32.totalorder %s2916_s13, 1  ;;  %s2916_s13 = sphi %s2974_s13, %s20_s13  }
   0x2   : > { %p324_p1 = scmp.lt.s32.totalorder %s2916_s13, 3 }
   0x4   : > { %p325_p2 = pnand %p2291_p0, %p324_p1 }
   0x6   : > { %328 = sbr.rel (%p325_p2) target bundleno = 1057 (0x421), region = 60 }
   0xd   : > { %v2720_v0 = vld [vmem:[%s3793_s2 + $0x4] ss:$8 sps:$4 sm:$0xff]   ;;  %s2292_s17 = sshll.u32 %s2287_s14, 5  ;;  %v2722_v1 = vld [vmem:[%s3793_s2] ss:$8 sps:$4 sm:$0xff]   ;;  %v2918_v2 = vmov 0  }
   0xe   : > { %603 = vmatprep.mubr.bf16.mxu0 %v2918_v2  ;;  %p368_p3 = scmp.lt.s32.totalorder %s2292_s17, 63  ;;  %723 = vmatprep.mubr.bf16.mxu1 %v2918_v2  ;;  %v2723_v3 = vld [vmem:[%s3793_s2 + $0x14] ss:$8 sps:$4 sm:$0xff]   ;;  %v2725_v4 = vld [vmem:[%s3793_s2 + $0x10] ss:$8 sps:$4 sm:$0xff]   ;;  %vm522_vm0 = vcmask 261120  }
   0xf   : > { %571 = vmatprep.subr.bf16.mxu0 %v2720_v0  ;;  %2707 = vmatprep.subr.bf16.mxu1 %v2720_v0  ;;  %v2726_v53 = vld [vmem:[%s3796_s5] sm:$0xff]   ;;  %v2727_v54 = vld [vmem:[%s3796_s5 + $0x8] sm:$0xff]   ;;  %v2728_v55 = vld [vmem:[%s3796_s5 + $0x10] sm:$0xff]  }
  0x10   : > { %572 = vmatpush1.bf16.msra.mxu0 %v2722_v1  ;;  %s3813_s17 = smov (!%p368_p3, %s2292_s17), 63  ;;  %2709 = vmatpush1.bf16.msra.mxu1 %v2722_v1  ;;  %v2729_v56 = vld [vmem:[%s3796_s5 + $0x18] sm:$0xff]   ;;  %v2730_v57 = vld [vmem:[%s3796_s5 + $0x20] sm:$0xff]   ;;  %v2731_v58 = vld [vmem:[%s3796_s5 + $0x28] sm:$0xff]  }
  0x11   : > { %573 = vmatprep.subr.bf16.mxu0 %v2723_v3  ;;  %2708 = vmatprep.subr.bf16.mxu1 %v2723_v3  ;;  %s2293_s24 = sshll.u32 %s3813_s17, 3  ;;  %v2732_v59 = vld [vmem:[%s3796_s5 + $0x30] sm:$0xff]   ;;  %v2733_v60 = vld [vmem:[%s3796_s5 + $0x38] sm:$0xff]   ;;  %v3095_v61 = vld [vmem:[%s3794_s3] ss:$0 sm:$0xff]  ;;  %s2295_s15 = sshll.u32 %s3813_s17, 2 }
  0x12   : > { %s3004_s27 = scalar_lea.vmem %s3791_s0, %s2293_s24  ;;  %s3394_s19 = scalar_lea.vmem %s3792_s1, %s2295_s15 }
  0x13   : > { %v386_v5 = vld [vmem:[%s3004_s27] sm:$0xff]  ;;  %v387_v6 = vld [vmem:[%s3004_s27 + $0x8] sm:$0xff]  ;;  %v388_v8 = vld [vmem:[%s3004_s27 + $0x10] sm:$0xff]  ;;  %s3659_s25 = scalar_lea.vmem %s3801_s10, %s2293_s24 }
  0x14   : > { %574 = vmatpush1.bf16.msra.mxu0 %v2725_v4  ;;  %2710 = vmatpush1.bf16.msra.mxu1 %v2725_v4  ;;  %v418_v7 = vpack.c.bf16 %v387_v6, %v386_v5  ;;  %v389_v9 = vld [vmem:[%s3004_s27 + $0x18] sm:$0xff]  ;;  %v410_v10 = vld [vmem:[%s3004_s27 + $0xc0] sm:$0xff]  ;;  %v411_v11 = vld [vmem:[%s3004_s27 + $0xc8] sm:$0xff] }
  0x15   : > { %v430_v12 = vpack.c.bf16 %v411_v11, %v410_v10  ;;  %v419_v13 = vpack.c.bf16 %v389_v9, %v388_v8  ;;  %v412_v14 = vld [vmem:[%s3004_s27 + $0xd0] sm:$0xff]  ;;  %v413_v15 = vld [vmem:[%s3004_s27 + $0xd8] sm:$0xff]  ;;  %v390_v16 = vld [vmem:[%s3004_s27 + $0x20] sm:$0xff]  ;;  %2563 = vmatprep.subr.bf16.mxu1 %v2726_v53 }
  0x16   : > { %v391_v17 = vld [vmem:[%s3004_s27 + $0x28] sm:$0xff]  ;;  %v431_v18 = vpack.c.bf16 %v413_v15, %v412_v14  ;;  %v414_v20 = vld [vmem:[%s3004_s27 + $0xe0] sm:$0xff]  ;;  %v392_v22 = vld [vmem:[%s3004_s27 + $0x30] sm:$0xff] }
  0x17   : > { %2302 = vmatmul.mubr.msk.bf16.vlgmr.msra.gmra.mrb[0].mxu0 %vm522_vm0, %v418_v7  ;;  %2314 = vmatmul.mubr.msk.bf16.vlgmr.msra.gmra.mrb[0].mxu1 %vm522_vm0, %v430_v12  ;;  %v420_v19 = vpack.c.bf16 %v391_v17, %v390_v16  ;;  %v415_v21 = vld [vmem:[%s3004_s27 + $0xe8] sm:$0xff]  ;;  %v393_v23 = vld [vmem:[%s3004_s27 + $0x38] sm:$0xff]  ;;  %v416_v26 = vld [vmem:[%s3004_s27 + $0xf0] sm:$0xff] }
  0x18   : > { %613 = vmatprep.mubr.bf16.mxu0 %v2918_v2  ;;  %733 = vmatprep.mubr.bf16.mxu1 %v2918_v2  ;;  %v432_v24 = vpack.c.bf16 %v415_v21, %v414_v20  ;;  %v421_v25 = vpack.c.bf16 %v393_v23, %v392_v22  ;;  %v417_v27 = vld [vmem:[%s3004_s27 + $0xf8] sm:$0xff]  ;;  %v394_v28 = vld [vmem:[%s3004_s27 + $0x40] sm:$0xff]  ;;  %v395_v29 = vld [vmem:[%s3004_s27 + $0x48] sm:$0xff] }
  0x19   : > { %v433_v30 = vpack.c.bf16 %v417_v27, %v416_v26  ;;  %v422_v31 = vpack.c.bf16 %v395_v29, %v394_v28  ;;  %v396_v32 = vld [vmem:[%s3004_s27 + $0x50] sm:$0xff]  ;;  %v397_v33 = vld [vmem:[%s3004_s27 + $0x58] sm:$0xff]  ;;  %v398_v35 = vld [vmem:[%s3004_s27 + $0x60] sm:$0xff]  ;;  %2564 = vmatpush3.bf16.msra.mxu1 %v2726_v53 }
  0x1a   : > { %v423_v34 = vpack.c.bf16 %v397_v33, %v396_v32  ;;  %v399_v36 = vld [vmem:[%s3004_s27 + $0x68] sm:$0xff]  ;;  %v400_v38 = vld [vmem:[%s3004_s27 + $0x70] sm:$0xff]  ;;  %v401_v39 = vld [vmem:[%s3004_s27 + $0x78] sm:$0xff]  ;;  %2565 = vmatprep.subr.bf16.mxu1 %v2727_v54 }
  0x1b   : > { %v424_v37 = vpack.c.bf16 %v399_v36, %v398_v35  ;;  %v425_v40 = vpack.c.bf16 %v401_v39, %v400_v38  ;;  %v402_v41 = vld [vmem:[%s3004_s27 + $0x80] sm:$0xff]  ;;  %v403_v42 = vld [vmem:[%s3004_s27 + $0x88] sm:$0xff]  ;;  %v404_v44 = vld [vmem:[%s3004_s27 + $0x90] sm:$0xff] }
  0x1c   : > { %v426_v43 = vpack.c.bf16 %v403_v42, %v402_v41  ;;  %v405_v45 = vld [vmem:[%s3004_s27 + $0x98] sm:$0xff]  ;;  %v406_v47 = vld [vmem:[%s3004_s27 + $0xa0] sm:$0xff]  ;;  %v407_v48 = vld [vmem:[%s3004_s27 + $0xa8] sm:$0xff] }
  0x1d   : > { %v427_v46 = vpack.c.bf16 %v405_v45, %v404_v44  ;;  %v428_v49 = vpack.c.bf16 %v407_v48, %v406_v47  ;;  %v408_v50 = vld [vmem:[%s3004_s27 + $0xb0] sm:$0xff]  ;;  %v409_v51 = vld [vmem:[%s3004_s27 + $0xb8] sm:$0xff]  ;;  %2566 = vmatpush3.bf16.msra.mxu1 %v2727_v54  ;;  %v3117_v10 = vld [vmem:[%s3798_s7] sm:$0xff]  }
  0x1e   : > { %v429_v52 = vpack.c.bf16 %v409_v51, %v408_v50  ;;  %2567 = vmatprep.subr.bf16.mxu1 %v2728_v55 }
  0x1f   : > { %2303 = vmatmul.mubr.msk.bf16.gmra.mrb[4].mxu0 %vm522_vm0, %v419_v13  ;;  %2315 = vmatmul.mubr.msk.bf16.gmra.mrb[4].mxu1 %vm522_vm0, %v431_v18 }
  0x20   : > { %623 = vmatprep.mubr.bf16.mxu0 %v2918_v2  ;;  %743 = vmatprep.mubr.bf16.mxu1 %v2918_v2 }
  0x21   : > { %2568 = vmatpush3.bf16.msra.mxu1 %v2728_v55 }
  0x22   : > { %2569 = vmatprep.subr.bf16.mxu1 %v2729_v56 }
  0x25   : > { %2570 = vmatpush3.bf16.msra.mxu1 %v2729_v56 }
  0x26   : > { %2571 = vmatprep.subr.bf16.mxu1 %v2730_v57 }
  0x27   : > { %2304 = vmatmul.mubr.msk.bf16.gmra.mrb[8].mxu0 %vm522_vm0, %v420_v19  ;;  %2316 = vmatmul.mubr.msk.bf16.gmra.mrb[8].mxu1 %vm522_vm0, %v432_v24 }
  0x28   : > { %633 = vmatprep.mubr.bf16.mxu0 %v2918_v2  ;;  %753 = vmatprep.mubr.bf16.mxu1 %v2918_v2 }
  0x29   : > { %2572 = vmatpush3.bf16.msra.mxu1 %v2730_v57 }
  0x2a   : > { %2573 = vmatprep.subr.bf16.mxu1 %v2731_v58 }
  0x2d   : > { %2574 = vmatpush3.bf16.msra.mxu1 %v2731_v58 }
  0x2e   : > { %2575 = vmatprep.subr.bf16.mxu1 %v2732_v59 }
  0x2f   : > { %2305 = vmatmul.mubr.msk.bf16.gmra.mrb[12].mxu0 %vm522_vm0, %v421_v25  ;;  %2317 = vmatmul.mubr.msk.bf16.gmra.mrb[12].mxu1 %vm522_vm0, %v433_v30 }
  0x30   : > { %643 = vmatprep.mubr.bf16.mxu0 %v2918_v2 }
  0x31   : > { %2576 = vmatpush3.bf16.msra.mxu1 %v2732_v59 }
  0x32   : > { %2577 = vmatprep.subr.bf16.mxu1 %v2733_v60 }
  0x35   : > { %2578 = vmatpush3.bf16.msra.mxu1 %v2733_v60 }
  0x36   : > { %2611 = vmatprep.subr.bf16.mxu1 %v3117_v10 }
  0x37   : > { %2306 = vmatmul.mubr.msk.bf16.gmra.mrb[16].mxu0 %vm522_vm0, %v422_v31 }
  0x38   : > { %653 = vmatprep.mubr.bf16.mxu0 %v2918_v2 }
  0x3f   : > { %2307 = vmatmul.mubr.msk.bf16.gmra.mrb[20].mxu0 %vm522_vm0, %v423_v34 }
  0x40   : > { %663 = vmatprep.mubr.bf16.mxu0 %v2918_v2 }
  0x47   : > { %2308 = vmatmul.mubr.msk.bf16.gmra.mrb[24].mxu0 %vm522_vm0, %v424_v37 }
  0x48   : > { %673 = vmatprep.mubr.bf16.mxu0 %v2918_v2 }
  0x4f   : > { %2309 = vmatmul.mubr.msk.bf16.gmra.mrb[28].mxu0 %vm522_vm0, %v425_v40 }
  0x50   : > { %683 = vmatprep.mubr.bf16.mxu0 %v2918_v2 }
  0x57   : > { %2310 = vmatmul.mubr.msk.bf16.gmra.mrb[32].mxu0 %vm522_vm0, %v426_v43 }
  0x58   : > { %693 = vmatprep.mubr.bf16.mxu0 %v2918_v2 }
  0x5f   : > { %2311 = vmatmul.mubr.msk.bf16.gmra.mrb[36].mxu0 %vm522_vm0, %v427_v46 }
  0x60   : > { %703 = vmatprep.mubr.bf16.mxu0 %v2918_v2 }
  0x67   : > { %2312 = vmatmul.mubr.msk.bf16.gmra.mrb[40].mxu0 %vm522_vm0, %v428_v49 }
  0x68   : > { %713 = vmatprep.mubr.bf16.mxu0 %v2918_v2 }
  0x6f   : > { %2313 = vmatmul.mubr.msk.bf16.gmra.mrb[44].mxu0 %vm522_vm0, %v429_v52 }
  0xea   : > { %v605_v62 = vpop.f32.mrb[0].mxu0  ;;  %v725_v7 = vpop.f32.mrb[0].mxu1 }
  0xeb   : > { %v3098_v63 = vadd.f32 %v3095_v61, %v605_v62  ;;  %v3100_v0 = vpop.f32.mrb[1].mxu0  ;;  %v3110_v8 = vadd.f32 %v3095_v61, %v725_v7  ;;  %v3112_v9 = vpop.f32.mrb[1].mxu1 }
  0xec   : > { %v609_v1 = vpop.f32.mrb[2].mxu0  ;;  %v729_v12 = vpop.f32.mrb[2].mxu1 }
  0xed   : > { %v835_v2 = vmul.f32 10.0, %v3098_v63  ;;  %v3104_v3 = vadd.f32 %v3095_v61, %v609_v1  ;;  %v3106_v4 = vpop.f32.mrb[3].mxu0  ;;  %v859_v14 = vmul.f32 10.0, %v3110_v8  ;;  %v3121_v15 = vadd.f32 %v3095_v61, %v729_v12  ;;  %v3123_v16 = vpop.f32.mrb[3].mxu1 }
  0xef   : > { %v867_v5 = vmul.f32 1.442695, %v835_v2  ;;  %v836_v6 = vmul.f32 10.0, %v3104_v3  ;;  %v915_v20 = vmul.f32 1.442695, %v859_v14  ;;  %v860_v21 = vmul.f32 10.0, %v3121_v15 }
  0xf0   : > { %v803_v2 = vmax.f32 %v3098_v63, 0.0 }
  0xf1   : > { %2750 = vpow2.f32 %v867_v5  ;;  %v869_v11 = vmul.f32 1.442695, %v836_v6  ;;  %v917_v25 = vmul.f32 1.442695, %v860_v21  ;;  %v804_v5 = vmax.f32 %v3104_v3, 0.0 }
  0xf2   : > { %v615_v13 = vpop.f32.mrb[4].mxu0  ;;  %v735_v28 = vpop.f32.mrb[4].mxu1  ;;  %v828_v21 = vmax.f32 %v3121_v15, 0.0 }
  0xf3   : > { %2752 = vpow2.f32 %v869_v11  ;;  %v3127_v17 = vadd.f32 %v3095_v61, %v615_v13  ;;  %v3129_v18 = vpop.f32.mrb[5].mxu0  ;;  %v3140_v29 = vadd.f32 %v3095_v61, %v735_v28  ;;  %v3142_v30 = vpop.f32.mrb[5].mxu1 }
  0xf4   : > { %v619_v19 = vpop.f32.mrb[6].mxu0  ;;  %2754 = vpow2.f32 %v915_v20  ;;  %v739_v32 = vpop.f32.mrb[6].mxu1  ;;  %v827_v20 = vmax.f32 %v3110_v8, 0.0 }
  0xf5   : > { %v837_v22 = vmul.f32 10.0, %v3127_v17  ;;  %v3134_v23 = vadd.f32 %v3095_v61, %v619_v19  ;;  %v3136_v24 = vpop.f32.mrb[7].mxu0  ;;  %2756 = vpow2.f32 %v917_v25  ;;  %v861_v34 = vmul.f32 10.0, %v3140_v29  ;;  %v3148_v36 = vpop.f32.mrb[7].mxu1 }
  0xf6   : > { %v3146_v35 = vadd.f32 %v3095_v61, %v739_v32 }
  0xf7   : > { %v871_v26 = vmul.f32 1.442695, %v837_v22  ;;  %v838_v27 = vmul.f32 10.0, %v3134_v23  ;;  %v919_v42 = vmul.f32 1.442695, %v861_v34 }
  0xf8   : > { %v862_v43 = vmul.f32 10.0, %v3146_v35 }
  0xf9   : > { %2758 = vpow2.f32 %v871_v26  ;;  %v873_v31 = vmul.f32 1.442695, %v838_v27 }
  0xfa   : > { %v625_v33 = vpop.f32.mrb[8].mxu0  ;;  %v921_v50 = vmul.f32 1.442695, %v862_v43  ;;  %v745_v53 = vpop.f32.mrb[8].mxu1  ;;  %v805_v43 = vmax.f32 %v3127_v17, 0.0 }
  0xfb   : > { %v2751_v37 = vpop.eup %2750  ;;  %2760 = vpow2.f32 %v873_v31  ;;  %v3151_v38 = vadd.f32 %v3095_v61, %v625_v33  ;;  %v3153_v39 = vpop.f32.mrb[9].mxu0  ;;  %v3164_v57 = vadd.f32 %v3095_v61, %v745_v53  ;;  %v829_v53 = vmax.f32 %v3140_v29, 0.0 }
  0xfc   : > { %v2319_v40 = vadd.f32 -1.0, %v2751_v37  ;;  %v629_v41 = vpop.f32.mrb[10].mxu0  ;;  %2762 = vpow2.f32 %v919_v42  ;;  %v3166_v58 = vpop.f32.mrb[9].mxu1 }
  0xfd   : > { %v2753_v44 = vpop.eup %2752  ;;  %v839_v45 = vmul.f32 10.0, %v3151_v38  ;;  %v3158_v46 = vadd.f32 %v3095_v61, %v629_v41  ;;  %v3160_v47 = vpop.f32.mrb[11].mxu0  ;;  %2764 = vpow2.f32 %v921_v50  ;;  %3802 = vst [vmem:[#allocation2_spill] sm:$0xff] %v3166_v58  ;;  %v863_v11 = vmul.f32 10.0, %v3164_v57 }
  0xfe   : > { %v963_v48 = vmul.f32 0.1, %v2319_v40  ;;  %v2320_v49 = vadd.f32 -1.0, %v2753_v44  ;;  %v2755_v54 = vpop.eup %2754  ;;  %v749_v62 = vpop.f32.mrb[10].mxu1  ;;  %v806_v44 = vmax.f32 %v3134_v23, 0.0 }
  0xff   : > { %v875_v51 = vmul.f32 1.442695, %v839_v45  ;;  %v840_v52 = vmul.f32 10.0, %v3158_v46  ;;  %v2343_v60 = vadd.f32 -1.0, %v2755_v54  ;;  %v2757_v1 = vpop.eup %2756  ;;  %v3171_v12 = vpop.f32.mrb[11].mxu1  ;;  %v3189_v42 = vadd.f32 %v3095_v61, %v749_v62 }
 0x100   : > { %v995_v55 = vmin.f32 %v963_v48, 0.0  ;;  %v964_v56 = vmul.f32 0.1, %v2320_v49  ;;  %3803 = vst [vmem:[#allocation3_spill] sm:$0xff] %v3171_v12  ;;  %v923_v26 = vmul.f32 1.442695, %v863_v11 }
 0x101   : > { %2766 = vpow2.f32 %v875_v51  ;;  %v877_v59 = vmul.f32 1.442695, %v840_v52  ;;  %v3186_v33 = vmul.f32 0.1, %v2343_v60  ;;  %v2344_v34 = vadd.f32 -1.0, %v2757_v1 }
 0x102   : > { %v996_v6 = vmin.f32 %v964_v56, 0.0  ;;  %v635_v7 = vpop.f32.mrb[12].mxu0  ;;  %v1027_v63 = vadd.f32 %v995_v55, %v803_v2  ;;  %v755_v49 = vpop.f32.mrb[12].mxu1  ;;  %v830_v2 = vmax.f32 %v3146_v35, 0.0 }
 0x103   : > { %v2759_v13 = vpop.eup %2758  ;;  %2768 = vpow2.f32 %v877_v59  ;;  %v3174_v14 = vadd.f32 %v3095_v61, %v635_v7  ;;  %v3176_v19 = vpop.f32.mrb[13].mxu0  ;;  %v988_v56 = vmul.f32 0.1, %v2344_v34  ;;  %v1019_v1 = vmin.f32 %v3186_v33, 0.0 }
 0x104   : > { %v1028_v22 = vadd.f32 %v996_v6, %v804_v5  ;;  %v2321_v3 = vadd.f32 -1.0, %v2759_v13  ;;  %v639_v25 = vpop.f32.mrb[14].mxu0  ;;  %2770 = vpow2.f32 %v923_v26  ;;  %v3195_v54 = vpop.f32.mrb[13].mxu1  ;;  %v864_v5 = vmul.f32 10.0, %v3189_v42 }
 0x105   : > { %v2761_v27 = vpop.eup %2760  ;;  %v841_v28 = vmul.f32 10.0, %v3174_v14  ;;  %v3182_v31 = vadd.f32 %v3095_v61, %v639_v25  ;;  %v3184_v32 = vpop.f32.mrb[15].mxu0 }
 0x106   : > { %v965_v37 = vmul.f32 0.1, %v2321_v3  ;;  %v2322_v40 = vadd.f32 -1.0, %v2761_v27  ;;  %v1059_v41 = vpack.c.bf16 %v1028_v22, %v1027_v63  ;;  %v2763_v50 = vpop.eup %2762  ;;  %v759_v17 = vpop.f32.mrb[14].mxu1 }
 0x107   : > { %v879_v45 = vmul.f32 1.442695, %v841_v28  ;;  %v842_v48 = vmul.f32 10.0, %v3182_v31  ;;  %v2345_v59 = vadd.f32 -1.0, %v2763_v50  ;;  %v2765_v60 = vpop.eup %2764  ;;  %v3200_v6 = vpop.f32.mrb[15].mxu1 }
 0x108   : > { %v997_v51 = vmin.f32 %v965_v37, 0.0  ;;  %v966_v52 = vmul.f32 0.1, %v2322_v40  ;;  %2579 = vmatprep.mubr.bf16.mxu1 %v1059_v41  ;;  %3804 = vst [vmem:[#allocation4_spill] sm:$0xff] %v3200_v6  ;;  %v2346_v22 = vadd.f32 -1.0, %v2765_v60  ;;  %v1020_v41 = vmin.f32 %v988_v56, 0.0 }
 0x109   : > { %2772 = vpow2.f32 %v879_v45  ;;  %v881_v55 = vmul.f32 1.442695, %v842_v48  ;;  %v989_v27 = vmul.f32 0.1, %v2345_v59  ;;  %v925_v28 = vmul.f32 1.442695, %v864_v5 }
 0x10a   : > { %v998_v23 = vmin.f32 %v966_v52, 0.0  ;;  %v645_v62 = vpop.f32.mrb[16].mxu0  ;;  %v1029_v11 = vadd.f32 %v997_v51, %v805_v43  ;;  %v3214_v43 = vadd.f32 %v3095_v61, %v755_v49  ;;  %v2735_v51 = vld [vmem:[%s3798_s7 + $0x8] sm:$0xff]   ;;  %v807_v52 = vmax.f32 %v3151_v38, 0.0 }
 0x10b   : > { %v2767_v7 = vpop.eup %2766  ;;  %2774 = vpow2.f32 %v881_v55  ;;  %v3203_v13 = vadd.f32 %v3095_v61, %v645_v62  ;;  %v3205_v63 = vpop.f32.mrb[17].mxu0  ;;  %v808_v55 = vmax.f32 %v3158_v46, 0.0  ;;  %v1021_v49 = vmin.f32 %v989_v27, 0.0 }
 0x10c   : > { %v1030_v3 = vadd.f32 %v998_v23, %v806_v44  ;;  %v2323_v25 = vadd.f32 -1.0, %v2767_v7  ;;  %v649_v26 = vpop.f32.mrb[18].mxu0  ;;  %v990_v44 = vmul.f32 0.1, %v2346_v22  ;;  %2776 = vpow2.f32 %v925_v28 }
 0x10d   : > { %v2769_v33 = vpop.eup %2768  ;;  %v843_v34 = vmul.f32 10.0, %v3203_v13  ;;  %v3209_v37 = vadd.f32 %v3095_v61, %v649_v26  ;;  %v3211_v40 = vpop.f32.mrb[19].mxu0  ;;  %v865_v7 = vmul.f32 10.0, %v3214_v43  ;;  %v3226_v46 = vadd.f32 %v1019_v1, %v827_v20  ;;  %v2736_v26 = vld [vmem:[%s3798_s7 + $0x10] sm:$0xff]  }
 0x10e   : > { %v1060_v45 = vpack.c.bf16 %v1030_v3, %v1029_v11  ;;  %v967_v48 = vmul.f32 0.1, %v2323_v25  ;;  %v2324_v50 = vadd.f32 -1.0, %v2769_v33  ;;  %v1022_v5 = vmin.f32 %v990_v44, 0.0  ;;  %v2771_v11 = vpop.eup %2770 }
 0x10f   : > { %v883_v59 = vmul.f32 1.442695, %v843_v34  ;;  %v844_v60 = vmul.f32 10.0, %v3209_v37  ;;  %v3230_v3 = vadd.f32 %v1020_v41, %v828_v21  ;;  %v3233_v25 = vadd.f32 %v3095_v61, %v759_v17 }
 0x110   : > { %v999_v23 = vmin.f32 %v967_v48, 0.0  ;;  %v968_v56 = vmul.f32 0.1, %v2324_v50  ;;  %2580 = vmatmul.mubr.bf16.vlgmr.msra.gmra.mrb[16].mxu1 %v1060_v45  ;;  %v2347_v20 = vadd.f32 -1.0, %v2771_v11  ;;  %v927_v1 = vmul.f32 1.442695, %v865_v7 }
 0x111   : > { %2778 = vpow2.f32 %v883_v59  ;;  %v885_v62 = vmul.f32 1.442695, %v844_v60  ;;  %2612 = vmatpush3.bf16.msra.mxu1 %v3117_v10  ;;  %v866_v17 = vmul.f32 10.0, %v3233_v25  ;;  %v3252_v50 = vadd.f32 %v1021_v49, %v829_v53  ;;  %v2737_v60 = vld [vmem:[%s3798_s7 + $0x18] sm:$0xff]  }
 0x112   : > { %v1000_v22 = vmin.f32 %v968_v56, 0.0  ;;  %v655_v38 = vpop.f32.mrb[20].mxu0  ;;  %2613 = vmatprep.subr.bf16.mxu1 %v2735_v51  ;;  %v1031_v15 = vadd.f32 %v999_v23, %v807_v52  ;;  %v3256_v44 = vadd.f32 %v1022_v5, %v830_v2  ;;  %v991_v29 = vmul.f32 0.1, %v2347_v20  ;;  %v2738_v20 = vld [vmem:[%s3798_s7 + $0x20] sm:$0xff]  }
 0x113   : > { %v2773_v10 = vpop.eup %2772  ;;  %2780 = vpow2.f32 %v885_v62  ;;  %v3239_v27 = vadd.f32 %v3095_v61, %v655_v38  ;;  %v3241_v8 = vpop.f32.mrb[21].mxu0  ;;  %v929_v35 = vmul.f32 1.442695, %v866_v17  ;;  %v831_v62 = vmax.f32 %v3164_v57, 0.0 }
 0x114   : > { %v1032_v21 = vadd.f32 %v1000_v22, %v808_v55  ;;  %v2325_v28 = vadd.f32 -1.0, %v2773_v10  ;;  %v659_v33 = vpop.f32.mrb[22].mxu0  ;;  %2782 = vpow2.f32 %v927_v1  ;;  %v809_v11 = vmax.f32 %v3174_v14, 0.0 }
 0x115   : > { %v2775_v34 = vpop.eup %2774  ;;  %v845_v41 = vmul.f32 10.0, %v3239_v27  ;;  %v3246_v45 = vadd.f32 %v3095_v61, %v659_v33  ;;  %v3248_v48 = vpop.f32.mrb[23].mxu0  ;;  %2614 = vmatpush3.bf16.msra.mxu1 %v2735_v51  ;;  %v810_v22 = vmax.f32 %v3182_v31, 0.0 }
 0x116   : > { %v969_v52 = vmul.f32 0.1, %v2325_v28  ;;  %v2326_v55 = vadd.f32 -1.0, %v2775_v34  ;;  %v1061_v59 = vpack.c.bf16 %v1032_v21, %v1031_v15  ;;  %2615 = vmatprep.subr.bf16.mxu1 %v2736_v26  ;;  %v2777_v7 = vpop.eup %2776 }
 0x117   : > { %v887_v23 = vmul.f32 1.442695, %v845_v41  ;;  %v846_v56 = vmul.f32 10.0, %v3246_v45  ;;  %v2348_v21 = vadd.f32 -1.0, %v2777_v7 }
 0x118   : > { %v1001_v53 = vmin.f32 %v969_v52, 0.0  ;;  %v970_v49 = vmul.f32 0.1, %v2326_v55  ;;  %2583 = vmatprep.mubr.bf16.mxu1 %v1061_v59  ;;  %v832_v55 = vmax.f32 %v3189_v42, 0.0 }
 0x119   : > { %2784 = vpow2.f32 %v887_v23  ;;  %v889_v51 = vmul.f32 1.442695, %v846_v56  ;;  %2616 = vmatpush3.bf16.msra.mxu1 %v2736_v26  ;;  %v1023_v26 = vmin.f32 %v991_v29, 0.0  ;;  %v992_v59 = vmul.f32 0.1, %v2348_v21 }
 0x11a   : > { %v1002_v38 = vmin.f32 %v970_v49, 0.0  ;;  %v665_v10 = vpop.f32.mrb[24].mxu0  ;;  %2786 = vpow2.f32 %v929_v35  ;;  %2617 = vmatprep.subr.bf16.mxu1 %v2737_v60  ;;  %v1033_v14 = vadd.f32 %v1001_v53, %v809_v11  ;;  %v2739_v53 = vld [vmem:[%s3798_s7 + $0x28] sm:$0xff]   ;;  %v812_v21 = vmax.f32 %v3209_v37, 0.0 }
 0x11b   : > { %v2779_v1 = vpop.eup %2778  ;;  %2788 = vpow2.f32 %v889_v51  ;;  %v3273_v57 = vadd.f32 %v3095_v61, %v665_v10  ;;  %v3275_v15 = vpop.f32.mrb[25].mxu0  ;;  %v3288_v51 = vadd.f32 %v1023_v26, %v831_v62  ;;  %v1024_v7 = vmin.f32 %v992_v59, 0.0 }
 0x11c   : > { %v1034_v28 = vadd.f32 %v1002_v38, %v810_v22  ;;  %v2327_v31 = vadd.f32 -1.0, %v2779_v1  ;;  %v669_v33 = vpop.f32.mrb[26].mxu0  ;;  %v811_v1 = vmax.f32 %v3203_v13, 0.0 }
 0x11d   : > { %v2781_v17 = vpop.eup %2780  ;;  %v847_v34 = vmul.f32 10.0, %v3273_v57  ;;  %v3279_v41 = vadd.f32 %v3095_v61, %v669_v33  ;;  %v3281_v52 = vpop.f32.mrb[27].mxu0  ;;  %2618 = vmatpush3.bf16.msra.mxu1 %v2737_v60  ;;  %v3290_v60 = vadd.f32 %v1024_v7, %v832_v55 }
 0x11e   : > { %v971_v23 = vmul.f32 0.1, %v2327_v31  ;;  %v2328_v56 = vadd.f32 -1.0, %v2781_v17  ;;  %v1062_v29 = vpack.c.bf16 %v1034_v28, %v1033_v14  ;;  %2619 = vmatprep.subr.bf16.mxu1 %v2738_v20  ;;  %v2783_v11 = vpop.eup %2782 }
 0x11f   : > { %v891_v49 = vmul.f32 1.442695, %v847_v34  ;;  %v848_v35 = vmul.f32 10.0, %v3279_v41  ;;  %v2349_v10 = vadd.f32 -1.0, %v2783_v11 }
 0x120   : > { %v1003_v22 = vmin.f32 %v971_v23, 0.0  ;;  %v972_v38 = vmul.f32 0.1, %v2328_v56  ;;  %2584 = vmatmul.mubr.bf16.gmra.mrb[20].mxu1 %v1062_v29 }
 0x121   : > { %2790 = vpow2.f32 %v891_v49  ;;  %v893_v42 = vmul.f32 1.442695, %v848_v35  ;;  %2620 = vmatpush3.bf16.msra.mxu1 %v2738_v20  ;;  %v993_v33 = vmul.f32 0.1, %v2349_v10  ;;  %v833_v49 = vmax.f32 %v3214_v43, 0.0 }
 0x122   : > { %v1004_v14 = vmin.f32 %v972_v38, 0.0  ;;  %v675_v28 = vpop.f32.mrb[28].mxu0  ;;  %2621 = vmatprep.subr.bf16.mxu1 %v2739_v53  ;;  %v1035_v20 = vadd.f32 %v1003_v22, %v811_v1  ;;  %v814_v43 = vmax.f32 %v3246_v45, 0.0 }
 0x123   : > { %v2785_v62 = vpop.eup %2784  ;;  %2792 = vpow2.f32 %v893_v42  ;;  %v3295_v26 = vadd.f32 %v3095_v61, %v675_v28  ;;  %v3297_v31 = vpop.f32.mrb[29].mxu0  ;;  %v1025_v35 = vmin.f32 %v993_v33, 0.0 }
 0x124   : > { %v2787_v34 = vpop.eup %2786  ;;  %v1036_v55 = vadd.f32 %v1004_v14, %v812_v21  ;;  %v2329_v13 = vadd.f32 -1.0, %v2785_v62  ;;  %v679_v59 = vpop.f32.mrb[30].mxu0  ;;  %v834_v14 = vmax.f32 %v3233_v25, 0.0  ;;  %v813_v62 = vmax.f32 %v3239_v27, 0.0 }
 0x125   : > { %v2789_v37 = vpop.eup %2788  ;;  %v849_v23 = vmul.f32 10.0, %v3295_v26  ;;  %v3303_v56 = vadd.f32 %v3095_v61, %v679_v59  ;;  %v3305_v29 = vpop.f32.mrb[31].mxu0  ;;  %2622 = vmatpush3.bf16.msra.mxu1 %v2739_v53  ;;  %v2350_v42 = vadd.f32 -1.0, %v2787_v34 }
 0x126   : > { %v973_v7 = vmul.f32 0.1, %v2329_v13  ;;  %v2330_v11 = vadd.f32 -1.0, %v2789_v37  ;;  %v1063_v38 = vpack.c.bf16 %v1036_v55, %v1035_v20  ;;  %v3312_v13 = vadd.f32 %v1025_v35, %v833_v49 }
 0x127   : > { %v895_v22 = vmul.f32 1.442695, %v849_v23  ;;  %v850_v10 = vmul.f32 10.0, %v3303_v56  ;;  %v994_v28 = vmul.f32 0.1, %v2350_v42 }
 0x128   : > { %v1005_v1 = vmin.f32 %v973_v7, 0.0  ;;  %v974_v21 = vmul.f32 0.1, %v2330_v11  ;;  %2587 = vmatprep.mubr.bf16.mxu1 %v1063_v38 }
 0x129   : > { %2794 = vpow2.f32 %v895_v22  ;;  %v897_v59 = vmul.f32 1.442695, %v850_v10  ;;  %v1026_v34 = vmin.f32 %v994_v28, 0.0 }
 0x12a   : > { %v1006_v53 = vmin.f32 %v974_v21, 0.0  ;;  %v685_v33 = vpop.f32.mrb[32].mxu0  ;;  %v1037_v25 = vadd.f32 %v1005_v1, %v813_v62 }
 0x12b   : > { %v2791_v20 = vpop.eup %2790  ;;  %2796 = vpow2.f32 %v897_v59  ;;  %v3315_v55 = vadd.f32 %v3095_v61, %v685_v33  ;;  %v3317_v37 = vpop.f32.mrb[33].mxu0  ;;  %v3319_v11 = vadd.f32 %v1026_v34, %v834_v14 }
 0x12c   : > { %v1038_v23 = vadd.f32 %v1006_v53, %v814_v43  ;;  %v2331_v7 = vadd.f32 -1.0, %v2791_v20  ;;  %v689_v27 = vpop.f32.mrb[34].mxu0  ;;  %v815_v43 = vmax.f32 %v3273_v57, 0.0  ;;  %v816_v53 = vmax.f32 %v3279_v41, 0.0 }
 0x12d   : > { %v2793_v38 = vpop.eup %2792  ;;  %v851_v45 = vmul.f32 10.0, %v3315_v55  ;;  %v3323_v49 = vadd.f32 %v3095_v61, %v689_v27  ;;  %v3325_v35 = vpop.f32.mrb[35].mxu0 }
 0x12e   : > { %v975_v42 = vmul.f32 0.1, %v2331_v7  ;;  %v2332_v22 = vadd.f32 -1.0, %v2793_v38  ;;  %v1064_v10 = vpack.c.bf16 %v1038_v23, %v1037_v25 }
 0x12f   : > { %v899_v1 = vmul.f32 1.442695, %v851_v45  ;;  %v852_v28 = vmul.f32 10.0, %v3323_v49 }
 0x130   : > { %v1007_v62 = vmin.f32 %v975_v42, 0.0  ;;  %v976_v14 = vmul.f32 0.1, %v2332_v22  ;;  %2588 = vmatmul.mubr.bf16.gmra.mrb[24].mxu1 %v1064_v10 }
 0x131   : > { %2798 = vpow2.f32 %v899_v1  ;;  %v901_v59 = vmul.f32 1.442695, %v852_v28 }
 0x132   : > { %v1008_v33 = vmin.f32 %v976_v14, 0.0  ;;  %v695_v34 = vpop.f32.mrb[36].mxu0  ;;  %v1039_v7 = vadd.f32 %v1007_v62, %v815_v43  ;;  %v817_v43 = vmax.f32 %v3295_v26, 0.0 }
 0x133   : > { %v2795_v20 = vpop.eup %2794  ;;  %2800 = vpow2.f32 %v901_v59  ;;  %v3333_v25 = vadd.f32 %v3095_v61, %v695_v34  ;;  %v3335_v23 = vpop.f32.mrb[37].mxu0 }
 0x134   : > { %v1040_v27 = vadd.f32 %v1008_v33, %v816_v53  ;;  %v2333_v38 = vadd.f32 -1.0, %v2795_v20  ;;  %v699_v45 = vpop.f32.mrb[38].mxu0  ;;  %v818_v53 = vmax.f32 %v3303_v56, 0.0 }
 0x135   : > { %v2797_v42 = vpop.eup %2796  ;;  %v853_v22 = vmul.f32 10.0, %v3333_v25  ;;  %v3339_v57 = vadd.f32 %v3095_v61, %v699_v45  ;;  %v3341_v41 = vpop.f32.mrb[39].mxu0 }
 0x136   : > { %v977_v10 = vmul.f32 0.1, %v2333_v38  ;;  %v2334_v1 = vadd.f32 -1.0, %v2797_v42  ;;  %v1065_v28 = vpack.c.bf16 %v1040_v27, %v1039_v7 }
 0x137   : > { %v903_v14 = vmul.f32 1.442695, %v853_v22  ;;  %v854_v59 = vmul.f32 10.0, %v3339_v57 }
 0x138   : > { %v1009_v34 = vmin.f32 %v977_v10, 0.0  ;;  %v978_v21 = vmul.f32 0.1, %v2334_v1  ;;  %2591 = vmatprep.mubr.bf16.mxu1 %v1065_v28 }
 0x139   : > { %2802 = vpow2.f32 %v903_v14  ;;  %v905_v62 = vmul.f32 1.442695, %v854_v59 }
 0x13a   : > { %v1010_v33 = vmin.f32 %v978_v21, 0.0  ;;  %v705_v20 = vpop.f32.mrb[40].mxu0  ;;  %v1041_v27 = vadd.f32 %v1009_v34, %v817_v43  ;;  %v819_v43 = vmax.f32 %v3315_v55, 0.0 }
 0x13b   : > { %v2799_v45 = vpop.eup %2798  ;;  %2804 = vpow2.f32 %v905_v62  ;;  %v3347_v38 = vadd.f32 %v3095_v61, %v705_v20  ;;  %v3349_v7 = vpop.f32.mrb[41].mxu0 }
 0x13c   : > { %v1042_v42 = vadd.f32 %v1010_v33, %v818_v53  ;;  %v2335_v22 = vadd.f32 -1.0, %v2799_v45  ;;  %v709_v10 = vpop.f32.mrb[42].mxu0  ;;  %v820_v53 = vmax.f32 %v3323_v49, 0.0 }
 0x13d   : > { %v2801_v1 = vpop.eup %2800  ;;  %v855_v28 = vmul.f32 10.0, %v3347_v38  ;;  %v792_v26 = vadd.f32 %v3095_v61, %v709_v10  ;;  %v3353_v14 = vpop.f32.mrb[43].mxu0 }
 0x13e   : > { %v979_v56 = vmul.f32 0.1, %v2335_v22  ;;  %v2336_v21 = vadd.f32 -1.0, %v2801_v1  ;;  %v1066_v59 = vpack.c.bf16 %v1042_v42, %v1041_v27 }
 0x13f   : > { %v907_v62 = vmul.f32 1.442695, %v855_v28  ;;  %v856_v17 = vmul.f32 10.0, %v792_v26 }
 0x140   : > { %v1011_v20 = vmin.f32 %v979_v56, 0.0  ;;  %v980_v5 = vmul.f32 0.1, %v2336_v21  ;;  %2592 = vmatmul.mubr.bf16.gmra.mrb[28].mxu1 %v1066_v59 }
 0x141   : > { %2806 = vpow2.f32 %v907_v62  ;;  %v909_v34 = vmul.f32 1.442695, %v856_v17 }
 0x142   : > { %v1012_v33 = vmin.f32 %v980_v5, 0.0  ;;  %v715_v45 = vpop.f32.mrb[44].mxu0  ;;  %v1043_v27 = vadd.f32 %v1011_v20, %v819_v43  ;;  %v821_v20 = vmax.f32 %v3333_v25, 0.0 }
 0x143   : > { %v2803_v2 = vpop.eup %2802  ;;  %2808 = vpow2.f32 %v909_v34  ;;  %v793_v10 = vadd.f32 %v3095_v61, %v715_v45  ;;  %v3358_v22 = vpop.f32.mrb[45].mxu0 }
 0x144   : > { %v1044_v42 = vadd.f32 %v1012_v33, %v820_v53  ;;  %v2337_v1 = vadd.f32 -1.0, %v2803_v2  ;;  %v719_v28 = vpop.f32.mrb[46].mxu0  ;;  %v822_v2 = vmax.f32 %v3339_v57, 0.0 }
 0x145   : > { %v2805_v56 = vpop.eup %2804  ;;  %v857_v21 = vmul.f32 10.0, %v793_v10  ;;  %v794_v17 = vadd.f32 %v3095_v61, %v719_v28  ;;  %v3361_v59 = vpop.f32.mrb[47].mxu0 }
 0x146   : > { %v981_v55 = vmul.f32 0.1, %v2337_v1  ;;  %v2338_v49 = vadd.f32 -1.0, %v2805_v56  ;;  %v1067_v5 = vpack.c.bf16 %v1044_v42, %v1043_v27 }
 0x147   : > { %v911_v62 = vmul.f32 1.442695, %v857_v21  ;;  %v858_v12 = vmul.f32 10.0, %v794_v17 }
 0x148   : > { %v1013_v34 = vmin.f32 %v981_v55, 0.0  ;;  %v982_v6 = vmul.f32 0.1, %v2338_v49  ;;  %2595 = vmatprep.mubr.bf16.mxu1 %v1067_v5  ;;  %v823_v49 = vmax.f32 %v3347_v38, 0.0  ;;  %v3805_v38 = vpack.c.bf16 %v3230_v3, %v3226_v46  ;;  %v2742_v3 = vld [vmem:[%s3799_s8] sm:$0xff]  }
 0x149   : > { %2810 = vpow2.f32 %v911_v62  ;;  %v913_v45 = vmul.f32 1.442695, %v858_v12  ;;  %v824_v12 = vmax.f32 %v792_v26, 0.0  ;;  %v3806_v26 = vpack.c.bf16 %v3256_v44, %v3252_v50  ;;  %v2743_v50 = vld [vmem:[%s3799_s8 + $0x8] sm:$0xff]   ;;  %2659 = vmatprep.subr.bf16.mxu0 %v2742_v3 }
 0x14a   : > { %v1014_v43 = vmin.f32 %v982_v6, 0.0  ;;  %v1045_v61 = vadd.f32 %v1013_v34, %v821_v20  ;;  %v3808_v46 = vpack.c.bf16 %v3319_v11, %v3312_v13  ;;  %2660 = vmatpush3.bf16.msra.mxu0 %v2742_v3  ;;  %v2476_v44 = vld [vmem:[%s3394_s19 + $0x8] sm:$0xff]  }
 0x14b   : > { %v2807_v53 = vpop.eup %2806  ;;  %2812 = vpow2.f32 %v913_v45  ;;  %2661 = vmatprep.subr.bf16.mxu0 %v2743_v50  ;;  %v2418_v11 = vunpack.c.l.bf16 %v2476_v44 }
 0x14c   : > { %v1046_v33 = vadd.f32 %v1014_v43, %v822_v2  ;;  %v2339_v28 = vadd.f32 -1.0, %v2807_v53  ;;  %v825_v53 = vmax.f32 %v793_v10, 0.0  ;;  %v2741_v10 = vld [vmem:[%s3798_s7 + $0x38] sm:$0xff]  }
 0x14d   : > { %v2809_v1 = vpop.eup %2808 }
 0x14e   : > { %v983_v56 = vmul.f32 0.1, %v2339_v28  ;;  %v2340_v27 = vadd.f32 -1.0, %v2809_v1  ;;  %v1068_v42 = vpack.c.bf16 %v1046_v33, %v1045_v61  ;;  %v826_v61 = vmax.f32 %v794_v17, 0.0  ;;  %2662 = vmatpush3.bf16.msra.mxu0 %v2743_v50 }
 0x14f   : > { %v3807_v17 = vpack.c.bf16 %v3290_v60, %v3288_v51  ;;  %v3400_v51 = vld [vmem:[%s3797_s6] ss:$0 sm:$0xff] }
 0x150   : > { %v1015_v21 = vmin.f32 %v983_v56, 0.0  ;;  %v984_v55 = vmul.f32 0.1, %v2340_v27  ;;  %2596 = vmatmul.mubr.bf16.gmra.mrb[32].mxu1 %v1068_v42  ;;  %v2413_v60 = vld [vmem:[%s3394_s19] sm:$0xff]  }
 0x152   : > { %v1016_v5 = vmin.f32 %v984_v55, 0.0  ;;  %v1047_v62 = vadd.f32 %v1015_v21, %v823_v49  ;;  %v2419_v21 = vunpack.c.h.bf16 %v2476_v44  ;;  %v2414_v55 = vunpack.c.l.bf16 %v2413_v60 }
 0x153   : > { %v2811_v25 = vpop.eup %2810 }
 0x154   : > { %v1048_v57 = vadd.f32 %v1016_v5, %v824_v12  ;;  %v2341_v6 = vadd.f32 -1.0, %v2811_v25  ;;  %v2415_v5 = vunpack.c.h.bf16 %v2413_v60 }
 0x155   : > { %v2813_v58 = vpop.eup %2812 }
 0x156   : > { %v985_v45 = vmul.f32 0.1, %v2341_v6  ;;  %v2342_v34 = vadd.f32 -1.0, %v2813_v58  ;;  %v1069_v20 = vpack.c.bf16 %v1048_v57, %v1047_v62  ;;  %v2740_v58 = vld [vmem:[%s3798_s7 + $0x30] sm:$0xff]  }
 0x157   : > { %2623 = vmatprep.subr.bf16.mxu1 %v2740_v58 }
 0x158   : > { %v1017_v2 = vmin.f32 %v985_v45, 0.0  ;;  %v986_v43 = vmul.f32 0.1, %v2342_v34  ;;  %2599 = vmatprep.mubr.bf16.mxu1 %v1069_v20  ;;  %2624 = vmatpush3.bf16.msra.mxu1 %v2740_v58 }
 0x159   : > { %2625 = vmatprep.subr.bf16.mxu1 %v2741_v10 }
 0x15a   : > { %v1018_v33 = vmin.f32 %v986_v43, 0.0  ;;  %v1049_v28 = vadd.f32 %v1017_v2, %v825_v53  ;;  %v2478_v53 = vld [vmem:[%s3394_s19 + $0x18] sm:$0xff]  }
 0x15c   : > { %v1050_v1 = vadd.f32 %v1018_v33, %v826_v61  ;;  %2626 = vmatpush3.bf16.msra.mxu1 %v2741_v10  ;;  %v2477_v61 = vld [vmem:[%s3394_s19 + $0x10] sm:$0xff]  }
 0x15d   : > { %v2422_v58 = vunpack.c.l.bf16 %v2477_v61 }
 0x15e   : > { %v1070_v56 = vpack.c.bf16 %v1050_v1, %v1049_v28  ;;  %v2426_v28 = vunpack.c.l.bf16 %v2478_v53 }
 0x160   : > { %2600 = vmatmul.mubr.bf16.gmra.mrb[36].mxu1 %v1070_v56 }
 0x161   : > { %2603 = vmatprep.mubr.bf16.mxu1 %v3805_v38  ;;  %v2427_v38 = vunpack.c.h.bf16 %v2478_v53 }
 0x168   : > { %2604 = vmatmul.mubr.bf16.gmra.mrb[40].mxu1 %v3806_v26 }
 0x169   : > { %2607 = vmatprep.mubr.bf16.mxu1 %v3807_v17  ;;  %v2423_v17 = vunpack.c.h.bf16 %v2477_v61 }
 0x170   : > { %2608 = vmatmul.mubr.bf16.gmra.mrb[44].mxu1 %v3808_v46 }
 0x1e3   : > { %v2581_v13 = vpop.f32.mrb[16].mxu1 }
 0x1e4   : > { %v1189_v27 = vadd.f32 %v2581_v13, %v3400_v51  ;;  %v1180_v42 = vpop.f32.mrb[17].mxu1 }
 0x1e5   : > { %v1181_v49 = vadd.f32 %v3400_v51, %v1180_v42  ;;  %v2582_v12 = vpop.f32.mrb[18].mxu1 }
 0x1e6   : > { %v1192_v25 = vadd.f32 %v2582_v12, %v3400_v51  ;;  %v1183_v62 = vpop.f32.mrb[19].mxu1  ;;  %v1309_v6 = vmul.f32 %v2418_v11, %v1189_v27 }
 0x1e7   : > { %v1184_v57 = vadd.f32 %v3400_v51, %v1183_v62  ;;  %v1307_v34 = vmul.f32 %v2414_v55, %v1181_v49  ;;  %v2479_v55 = vld [vmem:[%s3394_s19 + $0x20] sm:$0xff]  }
 0x1e8   : > { %v1310_v45 = vmul.f32 %v2419_v21, %v1192_v25  ;;  %v2480_v21 = vld [vmem:[%s3394_s19 + $0x28] sm:$0xff]  }
 0x1e9   : > { %v1308_v20 = vmul.f32 %v2415_v5, %v1184_v57  ;;  %v2434_v12 = vunpack.c.l.bf16 %v2480_v21  ;;  %v2435_v62 = vunpack.c.h.bf16 %v2480_v21  ;;  %v2430_v57 = vunpack.c.l.bf16 %v2479_v55 }
 0x1ea   : > { %v1340_v2 = vpack.c.bf16 %v1310_v45, %v1309_v6 }
 0x1eb   : > { %v1339_v43 = vpack.c.bf16 %v1308_v20, %v1307_v34  ;;  %v2431_v34 = vunpack.c.h.bf16 %v2479_v55 }
 0x1ed   : > { %2627 = vmatprep.mubr.bf16.mxu1 %v1339_v43 }
 0x1ee   : > { %2628 = vmatmul.mubr.bf16.vlgmr.msra.gmra.mrb[48].mxu1 %v1340_v2 }
 0x1f3   : > { %v2585_v33 = vpop.f32.mrb[20].mxu1 }
 0x1f4   : > { %v1205_v1 = vadd.f32 %v2585_v33, %v3400_v51  ;;  %v1196_v56 = vpop.f32.mrb[21].mxu1 }
 0x1f5   : > { %v1197_v26 = vadd.f32 %v3400_v51, %v1196_v56  ;;  %v2586_v10 = vpop.f32.mrb[22].mxu1 }
 0x1f6   : > { %v1208_v46 = vadd.f32 %v2586_v10, %v3400_v51  ;;  %v1199_v3 = vpop.f32.mrb[23].mxu1  ;;  %v1313_v44 = vmul.f32 %v2426_v28, %v1205_v1 }
 0x1f7   : > { %v1200_v50 = vadd.f32 %v3400_v51, %v1199_v3  ;;  %v1311_v13 = vmul.f32 %v2422_v58, %v1197_v26  ;;  %v2481_v58 = vld [vmem:[%s3394_s19 + $0x30] sm:$0xff]  }
 0x1f8   : > { %v1314_v60 = vmul.f32 %v2427_v38, %v1208_v46  ;;  %v2482_v38 = vld [vmem:[%s3394_s19 + $0x38] sm:$0xff]  }
 0x1f9   : > { %v1312_v11 = vmul.f32 %v2423_v17, %v1200_v50  ;;  %v2442_v10 = vunpack.c.l.bf16 %v2482_v38  ;;  %v2443_v3 = vunpack.c.h.bf16 %v2482_v38  ;;  %v2438_v50 = vunpack.c.l.bf16 %v2481_v58 }
 0x1fa   : > { %v1342_v27 = vpack.c.bf16 %v1314_v60, %v1313_v44 }
 0x1fb   : > { %v1341_v42 = vpack.c.bf16 %v1312_v11, %v1311_v13  ;;  %v2439_v13 = vunpack.c.h.bf16 %v2481_v58 }
 0x1fd   : > { %2631 = vmatprep.mubr.bf16.mxu1 %v1341_v42 }
 0x1fe   : > { %2632 = vmatmul.mubr.bf16.gmra.mrb[52].mxu1 %v1342_v27 }
 0x203   : > { %v2589_v49 = vpop.f32.mrb[24].mxu1 }
 0x204   : > { %v1221_v5 = vadd.f32 %v2589_v49, %v3400_v51  ;;  %v1212_v25 = vpop.f32.mrb[25].mxu1 }
 0x205   : > { %v1213_v6 = vadd.f32 %v3400_v51, %v1212_v25  ;;  %v2590_v45 = vpop.f32.mrb[26].mxu1 }
 0x206   : > { %v1224_v20 = vadd.f32 %v2590_v45, %v3400_v51  ;;  %v1215_v2 = vpop.f32.mrb[27].mxu1  ;;  %v1317_v53 = vmul.f32 %v2434_v12, %v1221_v5 }
 0x207   : > { %v1216_v43 = vadd.f32 %v3400_v51, %v1215_v2  ;;  %v1315_v33 = vmul.f32 %v2430_v57, %v1213_v6  ;;  %v2483_v57 = vld [vmem:[%s3394_s19 + $0x40] sm:$0xff]  }
 0x208   : > { %v1318_v61 = vmul.f32 %v2435_v62, %v1224_v20  ;;  %v2484_v62 = vld [vmem:[%s3394_s19 + $0x48] sm:$0xff]  }
 0x209   : > { %v1316_v28 = vmul.f32 %v2431_v34, %v1216_v43  ;;  %v2450_v45 = vunpack.c.l.bf16 %v2484_v62  ;;  %v2451_v2 = vunpack.c.h.bf16 %v2484_v62  ;;  %v2446_v43 = vunpack.c.l.bf16 %v2483_v57 }
 0x20a   : > { %v1344_v1 = vpack.c.bf16 %v1318_v61, %v1317_v53 }
 0x20b   : > { %v1343_v56 = vpack.c.bf16 %v1316_v28, %v1315_v33  ;;  %v2447_v33 = vunpack.c.h.bf16 %v2483_v57 }
 0x20d   : > { %2635 = vmatprep.mubr.bf16.mxu1 %v1343_v56 }
 0x20e   : > { %2636 = vmatmul.mubr.bf16.gmra.mrb[56].mxu1 %v1344_v1 }
 0x213   : > { %v2593_v26 = vpop.f32.mrb[28].mxu1 }
 0x214   : > { %v1237_v17 = vadd.f32 %v2593_v26, %v3400_v51  ;;  %v1228_v46 = vpop.f32.mrb[29].mxu1 }
 0x215   : > { %v1229_v44 = vadd.f32 %v3400_v51, %v1228_v46  ;;  %v2594_v60 = vpop.f32.mrb[30].mxu1 }
 0x216   : > { %v1240_v11 = vadd.f32 %v2594_v60, %v3400_v51  ;;  %v1231_v27 = vpop.f32.mrb[31].mxu1  ;;  %v1321_v21 = vmul.f32 %v2442_v10, %v1237_v17 }
 0x217   : > { %v1232_v42 = vadd.f32 %v3400_v51, %v1231_v27  ;;  %v1319_v49 = vmul.f32 %v2438_v50, %v1229_v44  ;;  %v2485_v50 = vld [vmem:[%s3394_s19 + $0x50] sm:$0xff]  }
 0x218   : > { %v1322_v55 = vmul.f32 %v2443_v3, %v1240_v11  ;;  %v2486_v3 = vld [vmem:[%s3394_s19 + $0x58] sm:$0xff]  }
 0x219   : > { %v1320_v12 = vmul.f32 %v2439_v13, %v1232_v42  ;;  %v2458_v60 = vunpack.c.l.bf16 %v2486_v3  ;;  %v2459_v27 = vunpack.c.h.bf16 %v2486_v3  ;;  %v2454_v42 = vunpack.c.l.bf16 %v2485_v50 }
 0x21a   : > { %v1346_v5 = vpack.c.bf16 %v1322_v55, %v1321_v21 }
 0x21b   : > { %v1345_v25 = vpack.c.bf16 %v1320_v12, %v1319_v49  ;;  %v2455_v49 = vunpack.c.h.bf16 %v2485_v50 }
 0x21d   : > { %2639 = vmatprep.mubr.bf16.mxu1 %v1345_v25 }
 0x21e   : > { %2640 = vmatmul.mubr.bf16.gmra.mrb[60].mxu1 %v1346_v5 }
 0x223   : > { %v2597_v6 = vpop.f32.mrb[32].mxu1 }
 0x224   : > { %v1253_v34 = vadd.f32 %v2597_v6, %v3400_v51  ;;  %v1244_v20 = vpop.f32.mrb[33].mxu1 }
 0x225   : > { %v1245_v53 = vadd.f32 %v3400_v51, %v1244_v20  ;;  %v2598_v61 = vpop.f32.mrb[34].mxu1  ;;  %v2487_v20 = vld [vmem:[%s3394_s19 + $0x60] sm:$0xff]  }
 0x226   : > { %v1256_v28 = vadd.f32 %v2598_v61, %v3400_v51  ;;  %v1247_v1 = vpop.f32.mrb[35].mxu1  ;;  %v1325_v38 = vmul.f32 %v2450_v45, %v1253_v34  ;;  %v2488_v34 = vld [vmem:[%s3394_s19 + $0x68] sm:$0xff]  }
 0x227   : > { %v1248_v56 = vadd.f32 %v3400_v51, %v1247_v1  ;;  %v1323_v26 = vmul.f32 %v2446_v43, %v1245_v53  ;;  %v2466_v61 = vunpack.c.l.bf16 %v2488_v34  ;;  %v2467_v1 = vunpack.c.h.bf16 %v2488_v34 }
 0x228   : > { %v1326_v58 = vmul.f32 %v2451_v2, %v1256_v28 }
 0x229   : > { %v1324_v10 = vmul.f32 %v2447_v33, %v1248_v56  ;;  %v2462_v56 = vunpack.c.l.bf16 %v2487_v20 }
 0x22a   : > { %v1348_v17 = vpack.c.bf16 %v1326_v58, %v1325_v38 }
 0x22b   : > { %v1347_v46 = vpack.c.bf16 %v1324_v10, %v1323_v26  ;;  %v2463_v26 = vunpack.c.h.bf16 %v2487_v20 }
 0x22d   : > { %2643 = vmatprep.mubr.bf16.mxu1 %v1347_v46 }
 0x22e   : > { %2644 = vmatmul.mubr.bf16.gmra.mrb[64].mxu1 %v1348_v17 }
 0x233   : > { %v2601_v44 = vpop.f32.mrb[36].mxu1 }
 0x234   : > { %v1269_v13 = vadd.f32 %v2601_v44, %v3400_v51  ;;  %v1260_v11 = vpop.f32.mrb[37].mxu1 }
 0x235   : > { %v1261_v21 = vadd.f32 %v3400_v51, %v1260_v11  ;;  %v2602_v55 = vpop.f32.mrb[38].mxu1  ;;  %v2489_v11 = vld [vmem:[%s3394_s19 + $0x70] sm:$0xff]  }
 0x236   : > { %v1272_v12 = vadd.f32 %v2602_v55, %v3400_v51  ;;  %v1263_v5 = vpop.f32.mrb[39].mxu1  ;;  %v1329_v62 = vmul.f32 %v2458_v60, %v1269_v13  ;;  %v2490_v13 = vld [vmem:[%s3394_s19 + $0x78] sm:$0xff]  }
 0x237   : > { %v1264_v25 = vadd.f32 %v3400_v51, %v1263_v5  ;;  %v1327_v6 = vmul.f32 %v2454_v42, %v1261_v21  ;;  %v2474_v55 = vunpack.c.l.bf16 %v2490_v13  ;;  %v2475_v5 = vunpack.c.h.bf16 %v2490_v13 }
 0x238   : > { %v1330_v57 = vmul.f32 %v2459_v27, %v1272_v12 }
 0x239   : > { %v1328_v45 = vmul.f32 %v2455_v49, %v1264_v25  ;;  %v2470_v25 = vunpack.c.l.bf16 %v2489_v11 }
 0x23a   : > { %v1350_v2 = vpack.c.bf16 %v1330_v57, %v1329_v62 }
 0x23b   : > { %v2605_v43 = vpop.f32.mrb[40].mxu1  ;;  %v1349_v53 = vpack.c.bf16 %v1328_v45, %v1327_v6  ;;  %v2471_v6 = vunpack.c.h.bf16 %v2489_v11 }
 0x23c   : > { %v1285_v33 = vadd.f32 %v2605_v43, %v3400_v51  ;;  %v1276_v28 = vpop.f32.mrb[41].mxu1 }
 0x23d   : > { %v1277_v38 = vadd.f32 %v3400_v51, %v1276_v28  ;;  %v2606_v58 = vpop.f32.mrb[42].mxu1  ;;  %2647 = vmatprep.mubr.bf16.mxu1 %v1349_v53 }
 0x23e   : > { %v1288_v10 = vadd.f32 %v2606_v58, %v3400_v51  ;;  %v1279_v17 = vpop.f32.mrb[43].mxu1  ;;  %2648 = vmatmul.mubr.bf16.gmra.mrb[68].mxu1 %v1350_v2  ;;  %v1333_v3 = vmul.f32 %v2466_v61, %v1285_v33  ;;  %v2744_v33 = vld [vmem:[%s3799_s8 + $0x10] sm:$0xff]  }
 0x23f   : > { %v1280_v46 = vadd.f32 %v3400_v51, %v1279_v17  ;;  %v1331_v44 = vmul.f32 %v2462_v56, %v1277_v38  ;;  %2663 = vmatprep.subr.bf16.mxu0 %v2744_v33  ;;  %v2745_v56 = vld [vmem:[%s3799_s8 + $0x18] sm:$0xff]   ;;  %v2747_v38 = vld [vmem:[%s3799_s8 + $0x28] sm:$0xff]   ;;  %v2748_v58 = vld [vmem:[%s3799_s8 + $0x30] sm:$0xff]  }
 0x240   : > { %v1334_v50 = vmul.f32 %v2467_v1, %v1288_v10  ;;  %2664 = vmatpush3.bf16.msra.mxu0 %v2744_v33  ;;  %v3470_v17 = vld [vmem:[%s3795_s4] ss:$0 sm:$0xff] }
 0x241   : > { %v1332_v60 = vmul.f32 %v2463_v26, %v1280_v46  ;;  %2665 = vmatprep.subr.bf16.mxu0 %v2745_v56  ;;  %v2749_v26 = vld [vmem:[%s3799_s8 + $0x38] sm:$0xff]  }
 0x242   : > { %v1352_v27 = vpack.c.bf16 %v1334_v50, %v1333_v3 }
 0x243   : > { %v2609_v42 = vpop.f32.mrb[44].mxu1  ;;  %v1351_v21 = vpack.c.bf16 %v1332_v60, %v1331_v44 }
 0x244   : > { %v1301_v49 = vadd.f32 %v2609_v42, %v3400_v51  ;;  %v1292_v12 = vpop.f32.mrb[45].mxu1  ;;  %2666 = vmatpush3.bf16.msra.mxu0 %v2745_v56 }
 0x245   : > { %v1293_v62 = vadd.f32 %v3400_v51, %v1292_v12  ;;  %v2610_v57 = vpop.f32.mrb[46].mxu1  ;;  %2651 = vmatprep.mubr.bf16.mxu1 %v1351_v21 }
 0x246   : > { %v1304_v45 = vadd.f32 %v2610_v57, %v3400_v51  ;;  %v1295_v34 = vpop.f32.mrb[47].mxu1  ;;  %2652 = vmatmul.mubr.bf16.gmra.mrb[72].mxu1 %v1352_v27  ;;  %v1337_v2 = vmul.f32 %v2474_v55, %v1301_v49 }
 0x247   : > { %v1296_v20 = vadd.f32 %v3400_v51, %v1295_v34  ;;  %v1335_v53 = vmul.f32 %v2470_v25, %v1293_v62  ;;  %v2746_v51 = vld [vmem:[%s3799_s8 + $0x20] sm:$0xff]  }
 0x248   : > { %v1338_v43 = vmul.f32 %v2475_v5, %v1304_v45  ;;  %2667 = vmatprep.subr.bf16.mxu0 %v2746_v51 }
 0x249   : > { %v1336_v61 = vmul.f32 %v2471_v6, %v1296_v20  ;;  %2668 = vmatpush3.bf16.msra.mxu0 %v2746_v51 }
 0x24a   : > { %v1354_v28 = vpack.c.bf16 %v1338_v43, %v1337_v2  ;;  %2669 = vmatprep.subr.bf16.mxu0 %v2747_v38 }
 0x24b   : > { %v1353_v1 = vpack.c.bf16 %v1336_v61, %v1335_v53 }
 0x24d   : > { %2655 = vmatprep.mubr.bf16.mxu1 %v1353_v1  ;;  %2670 = vmatpush3.bf16.msra.mxu0 %v2747_v38 }
 0x24e   : > { %2656 = vmatmul.mubr.bf16.gmra.mrb[76].mxu1 %v1354_v28  ;;  %2671 = vmatprep.subr.bf16.mxu0 %v2748_v58 }
 0x251   : > { %2672 = vmatpush3.bf16.msra.mxu0 %v2748_v58 }
 0x252   : > { %2673 = vmatprep.subr.bf16.mxu0 %v2749_v26 }
 0x255   : > { %2674 = vmatpush3.bf16.msra.mxu0 %v2749_v26 }
 0x2c1   : > { %v2629_v10 = vpop.f32.mrb[48].mxu1 }
 0x2c2   : > { %v1582_v46 = vadd.f32 %v2629_v10, %v3129_v18  ;;  %v1453_v3 = vpop.f32.mrb[49].mxu1 }
 0x2c3   : > { %v1580_v50 = vadd.f32 %v1453_v3, %v3100_v0  ;;  %v2630_v44 = vpop.f32.mrb[50].mxu1 }
 0x2c4   : > { %v1621_v60 = vadd.f32 %v3470_v17, %v1582_v46  ;;  %v1583_v13 = vadd.f32 %v2630_v44, %v3136_v24  ;;  %v1456_v11 = vpop.f32.mrb[51].mxu1 }
 0x2c5   : > { %v1619_v27 = vadd.f32 %v3470_v17, %v1580_v50  ;;  %v1581_v42 = vadd.f32 %v1456_v11, %v3106_v4 }
 0x2c6   : > { %v1685_v21 = vmul.f32 10.0, %v1621_v60  ;;  %v1622_v55 = vadd.f32 %v3470_v17, %v1583_v13  ;;  %v1653_v58 = vmax.f32 %v1621_v60, 0.0 }
 0x2c7   : > { %v1683_v49 = vmul.f32 10.0, %v1619_v27  ;;  %v1620_v12 = vadd.f32 %v3470_v17, %v1581_v42  ;;  %v1651_v46 = vmax.f32 %v1619_v27, 0.0 }
 0x2c8   : > { %v1719_v18 = vmul.f32 1.442695, %v1685_v21  ;;  %v1686_v5 = vmul.f32 10.0, %v1622_v55  ;;  %v1654_v60 = vmax.f32 %v1622_v55, 0.0 }
 0x2c9   : > { %v1715_v25 = vmul.f32 1.442695, %v1683_v49  ;;  %v1684_v0 = vmul.f32 10.0, %v1620_v12 }
 0x2ca   : > { %2814 = vpow2.f32 %v1719_v18  ;;  %v1721_v62 = vmul.f32 1.442695, %v1686_v5 }
 0x2cb   : > { %2816 = vpow2.f32 %v1715_v25  ;;  %v1717_v57 = vmul.f32 1.442695, %v1684_v0  ;;  %v1652_v25 = vmax.f32 %v1620_v12, 0.0 }
 0x2cc   : > { %2818 = vpow2.f32 %v1721_v62 }
 0x2cd   : > { %2820 = vpow2.f32 %v1717_v57 }
 0x2d1   : > { %v2633_v24 = vpop.f32.mrb[52].mxu1 }
 0x2d2   : > { %v1586_v6 = vadd.f32 %v2633_v24, %v3176_v19  ;;  %v1469_v4 = vpop.f32.mrb[53].mxu1 }
 0x2d3   : > { %v1584_v45 = vadd.f32 %v1469_v4, %v3153_v39  ;;  %v2634_v34 = vpop.f32.mrb[54].mxu1 }
 0x2d4   : > { %v2815_v20 = vpop.eup %2814  ;;  %v3483_v2 = vadd.f32 %v3470_v17, %v1586_v6  ;;  %v1587_v43 = vadd.f32 %v2634_v34, %v3184_v32  ;;  %v1472_v53 = vpop.f32.mrb[55].mxu1 }
 0x2d5   : > { %v2817_v61 = vpop.eup %2816  ;;  %v2371_v33 = vadd.f32 -1.0, %v2815_v20  ;;  %v3487_v28 = vadd.f32 %v3470_v17, %v1584_v45  ;;  %v1585_v1 = vadd.f32 %v1472_v53, %v3160_v47 }
 0x2d6   : > { %v2819_v56 = vpop.eup %2818  ;;  %v2369_v19 = vadd.f32 -1.0, %v2817_v61  ;;  %v1689_v51 = vmul.f32 10.0, %v3483_v2  ;;  %v3492_v39 = vadd.f32 %v3470_v17, %v1587_v43 }
 0x2d7   : > { %v2821_v38 = vpop.eup %2820  ;;  %v1813_v26 = vmul.f32 0.1, %v2371_v33  ;;  %v2372_v10 = vadd.f32 -1.0, %v2819_v56  ;;  %v1687_v32 = vmul.f32 10.0, %v3487_v28  ;;  %v3497_v42 = vadd.f32 %v3470_v17, %v1585_v1 }
 0x2d8   : > { %v2370_v3 = vadd.f32 -1.0, %v2821_v38  ;;  %v1727_v50 = vmul.f32 1.442695, %v1689_v51  ;;  %v1690_v44 = vmul.f32 10.0, %v3492_v39  ;;  %v1811_v49 = vmul.f32 0.1, %v2369_v19 }
 0x2d9   : > { %v1845_v13 = vmin.f32 %v1813_v26, 0.0  ;;  %v1814_v47 = vmul.f32 0.1, %v2372_v10  ;;  %v1723_v11 = vmul.f32 1.442695, %v1687_v32  ;;  %v1688_v27 = vmul.f32 10.0, %v3497_v42 }
 0x2da   : > { %2822 = vpow2.f32 %v1727_v50  ;;  %v1729_v21 = vmul.f32 1.442695, %v1690_v44  ;;  %v1812_v18 = vmul.f32 0.1, %v2370_v3  ;;  %v1843_v0 = vmin.f32 %v1811_v49, 0.0 }
 0x2db   : > { %v1846_v5 = vmin.f32 %v1814_v47, 0.0  ;;  %2824 = vpow2.f32 %v1723_v11  ;;  %v1877_v57 = vadd.f32 %v1845_v13, %v1653_v58  ;;  %v1725_v6 = vmul.f32 1.442695, %v1688_v27 }
 0x2dc   : > { %2826 = vpow2.f32 %v1729_v21  ;;  %v1844_v62 = vmin.f32 %v1812_v18, 0.0  ;;  %v1875_v4 = vadd.f32 %v1843_v0, %v1651_v46  ;;  %v1657_v27 = vmax.f32 %v3483_v2, 0.0 }
 0x2dd   : > { %v1878_v24 = vadd.f32 %v1846_v5, %v1654_v60  ;;  %2828 = vpow2.f32 %v1725_v6  ;;  %v1658_v0 = vmax.f32 %v3492_v39, 0.0 }
 0x2de   : > { %v1876_v45 = vadd.f32 %v1844_v62, %v1652_v25 }
 0x2df   : > { %v1908_v34 = vpack.c.bf16 %v1878_v24, %v1877_v57 }
 0x2e0   : > { %v1907_v20 = vpack.c.bf16 %v1876_v45, %v1875_v4  ;;  %v1655_v45 = vmax.f32 %v3487_v28, 0.0 }
 0x2e1   : > { %v2637_v43 = vpop.f32.mrb[56].mxu1 }
 0x2e2   : > { %v1590_v53 = vadd.f32 %v2637_v43, %v3241_v8  ;;  %v1485_v55 = vpop.f32.mrb[57].mxu1  ;;  %2675 = vmatprep.mubr.bf16.mxu0 %v1907_v20 }
 0x2e3   : > { %v1588_v12 = vadd.f32 %v1485_v55, %v3205_v63  ;;  %v2638_v61 = vpop.f32.mrb[58].mxu1  ;;  %2676 = vmatmul.mubr.bf16.vlgmr.msra.gmra.mrb[48].mxu0 %v1908_v34  ;;  %v1656_v34 = vmax.f32 %v3497_v42, 0.0 }
 0x2e4   : > { %v2823_v33 = vpop.eup %2822  ;;  %v3503_v1 = vadd.f32 %v3470_v17, %v1590_v53  ;;  %v1591_v56 = vadd.f32 %v2638_v61, %v3248_v48  ;;  %v1488_v19 = vpop.f32.mrb[59].mxu1 }
 0x2e5   : > { %v2825_v51 = vpop.eup %2824  ;;  %v2375_v38 = vadd.f32 -1.0, %v2823_v33  ;;  %v3507_v58 = vadd.f32 %v3470_v17, %v1588_v12  ;;  %v1589_v8 = vadd.f32 %v1488_v19, %v3211_v40 }
 0x2e6   : > { %v2827_v26 = vpop.eup %2826  ;;  %v2373_v10 = vadd.f32 -1.0, %v2825_v51  ;;  %v1693_v63 = vmul.f32 10.0, %v3503_v1  ;;  %v3512_v32 = vadd.f32 %v3470_v17, %v1591_v56 }
 0x2e7   : > { %v2376_v46 = vadd.f32 -1.0, %v2827_v26  ;;  %v1691_v3 = vmul.f32 10.0, %v3507_v58  ;;  %v3516_v48 = vadd.f32 %v3470_v17, %v1589_v8  ;;  %v1817_v11 = vmul.f32 0.1, %v2375_v38  ;;  %v2829_v21 = vpop.eup %2828 }
 0x2e8   : > { %v1735_v50 = vmul.f32 1.442695, %v1693_v63  ;;  %v1694_v44 = vmul.f32 10.0, %v3512_v32  ;;  %v1815_v13 = vmul.f32 0.1, %v2373_v10  ;;  %v2374_v60 = vadd.f32 -1.0, %v2829_v21 }
 0x2e9   : > { %v1731_v47 = vmul.f32 1.442695, %v1691_v3  ;;  %v1692_v40 = vmul.f32 10.0, %v3516_v48  ;;  %v1818_v18 = vmul.f32 0.1, %v2376_v46  ;;  %v1849_v25 = vmin.f32 %v1817_v11, 0.0 }
 0x2ea   : > { %2830 = vpow2.f32 %v1735_v50  ;;  %v1737_v49 = vmul.f32 1.442695, %v1694_v44  ;;  %v1816_v57 = vmul.f32 0.1, %v2374_v60  ;;  %v1847_v24 = vmin.f32 %v1815_v13, 0.0 }
 0x2eb   : > { %2832 = vpow2.f32 %v1731_v47  ;;  %v1733_v5 = vmul.f32 1.442695, %v1692_v40  ;;  %v1850_v62 = vmin.f32 %v1818_v18, 0.0  ;;  %v1881_v6 = vadd.f32 %v1849_v25, %v1657_v27 }
 0x2ec   : > { %2834 = vpow2.f32 %v1737_v49  ;;  %v1848_v20 = vmin.f32 %v1816_v57, 0.0  ;;  %v1879_v55 = vadd.f32 %v1847_v24, %v1655_v45  ;;  %v1659_v40 = vmax.f32 %v3507_v58, 0.0 }
 0x2ed   : > { %2836 = vpow2.f32 %v1733_v5  ;;  %v1882_v4 = vadd.f32 %v1850_v62, %v1658_v0  ;;  %v1660_v62 = vmax.f32 %v3516_v48, 0.0  ;;  %v1662_v58 = vmax.f32 %v3512_v32, 0.0 }
 0x2ee   : > { %v1880_v12 = vadd.f32 %v1848_v20, %v1656_v34 }
 0x2ef   : > { %v1910_v43 = vpack.c.bf16 %v1882_v4, %v1881_v6  ;;  %v1661_v6 = vmax.f32 %v3503_v1, 0.0 }
 0x2f0   : > { %v1909_v33 = vpack.c.bf16 %v1880_v12, %v1879_v55 }
 0x2f1   : > { %v2641_v53 = vpop.f32.mrb[60].mxu1 }
 0x2f2   : > { %v1594_v2 = vadd.f32 %v2641_v53, %v3297_v31  ;;  %v1501_v61 = vpop.f32.mrb[61].mxu1  ;;  %2679 = vmatprep.mubr.bf16.mxu0 %v1909_v33 }
 0x2f3   : > { %v1592_v39 = vadd.f32 %v1501_v61, %v3275_v15  ;;  %v2642_v56 = vpop.f32.mrb[62].mxu1  ;;  %2680 = vmatmul.mubr.bf16.gmra.mrb[52].mxu0 %v1910_v43 }
 0x2f4   : > { %v2831_v19 = vpop.eup %2830  ;;  %v3527_v51 = vadd.f32 %v3470_v17, %v1594_v2  ;;  %v1595_v28 = vadd.f32 %v2642_v56, %v3305_v29  ;;  %v1504_v38 = vpop.f32.mrb[63].mxu1 }
 0x2f5   : > { %v2833_v42 = vpop.eup %2832  ;;  %v3531_v8 = vadd.f32 %v3470_v17, %v1592_v39  ;;  %v1593_v26 = vadd.f32 %v1504_v38, %v3281_v52  ;;  %v2379_v10 = vadd.f32 -1.0, %v2831_v19 }
 0x2f6   : > { %v2835_v31 = vpop.eup %2834  ;;  %v2377_v63 = vadd.f32 -1.0, %v2833_v42  ;;  %v1697_v15 = vmul.f32 10.0, %v3527_v51  ;;  %v3536_v46 = vadd.f32 %v3470_v17, %v1595_v28 }
 0x2f7   : > { %v2837_v3 = vpop.eup %2836  ;;  %v2380_v50 = vadd.f32 -1.0, %v2835_v31  ;;  %v1695_v29 = vmul.f32 10.0, %v3531_v8  ;;  %v3540_v44 = vadd.f32 %v3470_v17, %v1593_v26  ;;  %v1821_v5 = vmul.f32 0.1, %v2379_v10 }
 0x2f8   : > { %v2378_v13 = vadd.f32 -1.0, %v2837_v3  ;;  %v1743_v47 = vmul.f32 1.442695, %v1697_v15  ;;  %v1698_v52 = vmul.f32 10.0, %v3536_v46  ;;  %v1819_v49 = vmul.f32 0.1, %v2377_v63 }
 0x2f9   : > { %v1739_v11 = vmul.f32 1.442695, %v1695_v29  ;;  %v1696_v21 = vmul.f32 10.0, %v3540_v44  ;;  %v1822_v0 = vmul.f32 0.1, %v2380_v50  ;;  %v1853_v24 = vmin.f32 %v1821_v5, 0.0 }
 0x2fa   : > { %2838 = vpow2.f32 %v1743_v47  ;;  %v1745_v18 = vmul.f32 1.442695, %v1698_v52  ;;  %v1820_v60 = vmul.f32 0.1, %v2378_v13  ;;  %v1851_v27 = vmin.f32 %v1819_v49, 0.0 }
 0x2fb   : > { %2840 = vpow2.f32 %v1739_v11  ;;  %v1741_v25 = vmul.f32 1.442695, %v1696_v21  ;;  %v1854_v4 = vmin.f32 %v1822_v0, 0.0  ;;  %v1885_v20 = vadd.f32 %v1853_v24, %v1661_v6 }
 0x2fc   : > { %2842 = vpow2.f32 %v1745_v18  ;;  %v1852_v57 = vmin.f32 %v1820_v60, 0.0  ;;  %v1883_v45 = vadd.f32 %v1851_v27, %v1659_v40  ;;  %v1665_v52 = vmax.f32 %v3527_v51, 0.0 }
 0x2fd   : > { %2844 = vpow2.f32 %v1741_v25  ;;  %v1886_v43 = vadd.f32 %v1854_v4, %v1662_v58  ;;  %v1663_v40 = vmax.f32 %v3531_v8, 0.0  ;;  %v1664_v5 = vmax.f32 %v3540_v44, 0.0 }
 0x2fe   : > { %v1884_v34 = vadd.f32 %v1852_v57, %v1660_v62  ;;  %v1666_v0 = vmax.f32 %v3536_v46, 0.0 }
 0x2ff   : > { %v1912_v12 = vpack.c.bf16 %v1886_v43, %v1885_v20 }
 0x300   : > { %v1911_v53 = vpack.c.bf16 %v1884_v34, %v1883_v45 }
 0x301   : > { %v2645_v55 = vpop.f32.mrb[64].mxu1 }
 0x302   : > { %v1598_v2 = vadd.f32 %v2645_v55, %v3335_v23  ;;  %v1517_v61 = vpop.f32.mrb[65].mxu1  ;;  %2683 = vmatprep.mubr.bf16.mxu0 %v1911_v53 }
 0x303   : > { %v1596_v48 = vadd.f32 %v1517_v61, %v3317_v37  ;;  %v2646_v39 = vpop.f32.mrb[66].mxu1  ;;  %2684 = vmatmul.mubr.bf16.gmra.mrb[56].mxu0 %v1912_v12 }
 0x304   : > { %v2839_v1 = vpop.eup %2838  ;;  %v3551_v32 = vadd.f32 %v3470_v17, %v1598_v2  ;;  %v1599_v33 = vadd.f32 %v2646_v39, %v3341_v41  ;;  %v1520_v56 = vpop.f32.mrb[67].mxu1 }
 0x305   : > { %v2841_v19 = vpop.eup %2840  ;;  %v3555_v28 = vadd.f32 %v3470_v17, %v1596_v48  ;;  %v1597_v38 = vadd.f32 %v1520_v56, %v3325_v35  ;;  %v2383_v42 = vadd.f32 -1.0, %v2839_v1 }
 0x306   : > { %v2843_v23 = vpop.eup %2842  ;;  %v2381_v26 = vadd.f32 -1.0, %v2841_v19  ;;  %v1701_v37 = vmul.f32 10.0, %v3551_v32  ;;  %v3560_v31 = vadd.f32 %v3470_v17, %v1599_v33 }
 0x307   : > { %v2845_v10 = vpop.eup %2844  ;;  %v2384_v63 = vadd.f32 -1.0, %v2843_v23  ;;  %v1699_v15 = vmul.f32 10.0, %v3555_v28  ;;  %v3564_v41 = vadd.f32 %v3470_v17, %v1597_v38  ;;  %v1825_v21 = vmul.f32 0.1, %v2383_v42 }
 0x308   : > { %v2382_v3 = vadd.f32 -1.0, %v2845_v10  ;;  %v1751_v50 = vmul.f32 1.442695, %v1701_v37  ;;  %v1702_v35 = vmul.f32 10.0, %v3560_v31  ;;  %v1823_v47 = vmul.f32 0.1, %v2381_v26 }
 0x309   : > { %v1747_v29 = vmul.f32 1.442695, %v1699_v15  ;;  %v1700_v13 = vmul.f32 10.0, %v3564_v41  ;;  %v1826_v60 = vmul.f32 0.1, %v2384_v63  ;;  %v1857_v27 = vmin.f32 %v1825_v21, 0.0 }
 0x30a   : > { %v1824_v11 = vmul.f32 0.1, %v2382_v3  ;;  %v1855_v18 = vmin.f32 %v1823_v47, 0.0  ;;  %v1753_v62 = vmul.f32 1.442695, %v1702_v35  ;;  %v1668_v42 = vmax.f32 %v3564_v41, 0.0 }
 0x30b   : > { %2846 = vpow2.f32 %v1747_v29  ;;  %v1749_v49 = vmul.f32 1.442695, %v1700_v13  ;;  %v1858_v57 = vmin.f32 %v1826_v60, 0.0  ;;  %v1889_v6 = vadd.f32 %v1857_v27, %v1665_v52 }
 0x30c   : > { %2848 = vpow2.f32 %v1751_v50  ;;  %v1856_v25 = vmin.f32 %v1824_v11, 0.0  ;;  %v1887_v24 = vadd.f32 %v1855_v18, %v1663_v40 }
 0x30d   : > { %2850 = vpow2.f32 %v1749_v49  ;;  %v1890_v8 = vadd.f32 %v1858_v57, %v1666_v0 }
 0x30e   : > { %v1888_v51 = vadd.f32 %v1856_v25, %v1664_v5  ;;  %2852 = vpow2.f32 %v1753_v62 }
 0x30f   : > { %v1914_v45 = vpack.c.bf16 %v1890_v8, %v1889_v6 }
 0x310   : > { %v1913_v58 = vpack.c.bf16 %v1888_v51, %v1887_v24 }
 0x311   : > { %v2649_v4 = vpop.f32.mrb[68].mxu1 }
 0x312   : > { %v1602_v34 = vadd.f32 %v2649_v4, %v3358_v22  ;;  %v1533_v20 = vpop.f32.mrb[69].mxu1  ;;  %2687 = vmatprep.mubr.bf16.mxu0 %v1913_v58 }
 0x313   : > { %v1600_v44 = vadd.f32 %v1533_v20, %v3349_v7  ;;  %v2650_v43 = vpop.f32.mrb[70].mxu1  ;;  %2688 = vmatmul.mubr.bf16.gmra.mrb[60].mxu0 %v1914_v45  ;;  %v3809_v20 = vld [vmem:[#allocation2_spill] sm:$0xff] }
 0x314   : > { %v3575_v46 = vadd.f32 %v3470_v17, %v1602_v34  ;;  %v1603_v53 = vadd.f32 %v2650_v43, %v3361_v59  ;;  %v1536_v55 = vpop.f32.mrb[71].mxu1  ;;  %v1667_v59 = vmax.f32 %v3555_v28, 0.0 }
 0x315   : > { %v2847_v12 = vpop.eup %2846  ;;  %v3579_v2 = vadd.f32 %v3470_v17, %v1600_v44  ;;  %v1601_v61 = vadd.f32 %v1536_v55, %v3353_v14 }
 0x316   : > { %v2849_v48 = vpop.eup %2848  ;;  %v2385_v22 = vadd.f32 -1.0, %v2847_v12  ;;  %v1705_v39 = vmul.f32 10.0, %v3575_v46  ;;  %v3584_v7 = vadd.f32 %v3470_v17, %v1603_v53 }
 0x317   : > { %v2851_v1 = vpop.eup %2850  ;;  %v1703_v33 = vmul.f32 10.0, %v3579_v2  ;;  %v3588_v56 = vadd.f32 %v3470_v17, %v1601_v61  ;;  %v2387_v14 = vadd.f32 -1.0, %v2849_v48  ;;  %v3810_v61 = vld [vmem:[#allocation4_spill] sm:$0xff] }
 0x318   : > { %v2386_v19 = vadd.f32 -1.0, %v2851_v1  ;;  %v1759_v38 = vmul.f32 1.442695, %v1705_v39  ;;  %v1706_v23 = vmul.f32 10.0, %v3584_v7  ;;  %v1827_v50 = vmul.f32 0.1, %v2385_v22  ;;  %v2853_v29 = vpop.eup %2852 }
 0x319   : > { %v1755_v26 = vmul.f32 1.442695, %v1703_v33  ;;  %v1704_v37 = vmul.f32 10.0, %v3588_v56  ;;  %v2653_v10 = vpop.f32.mrb[72].mxu1  ;;  %v2388_v18 = vadd.f32 -1.0, %v2853_v29  ;;  %v1670_v33 = vmax.f32 %v3560_v31, 0.0 }
 0x31a   : > { %2854 = vpow2.f32 %v1759_v38  ;;  %v1761_v63 = vmul.f32 1.442695, %v1706_v23  ;;  %v1606_v15 = vadd.f32 %v2653_v10, %v3142_v30  ;;  %v1549_v3 = vpop.f32.mrb[73].mxu1  ;;  %v1828_v47 = vmul.f32 0.1, %v2386_v19 }
 0x31b   : > { %2856 = vpow2.f32 %v1755_v26  ;;  %v1757_v28 = vmul.f32 1.442695, %v1704_v37  ;;  %v1604_v35 = vadd.f32 %v1549_v3, %v3112_v9  ;;  %v2654_v13 = vpop.f32.mrb[74].mxu1  ;;  %v1859_v11 = vmin.f32 %v1827_v50, 0.0 }
 0x31c   : > { %2858 = vpow2.f32 %v1761_v63  ;;  %v3597_v41 = vadd.f32 %v3470_v17, %v1606_v15  ;;  %v1607_v52 = vadd.f32 %v2654_v13, %v3148_v36  ;;  %v1552_v40 = vpop.f32.mrb[75].mxu1  ;;  %v1860_v49 = vmin.f32 %v1828_v47, 0.0 }
 0x31d   : > { %2860 = vpow2.f32 %v1757_v28  ;;  %v3601_v30 = vadd.f32 %v3470_v17, %v1604_v35  ;;  %v1605_v21 = vadd.f32 %v1552_v40, %v3123_v16  ;;  %v1891_v36 = vadd.f32 %v1859_v11, %v1667_v59  ;;  %v3811_v35 = vld [vmem:[#allocation3_spill] sm:$0xff] }
 0x31e   : > { %v1709_v9 = vmul.f32 10.0, %v3597_v41  ;;  %v3606_v60 = vadd.f32 %v3470_v17, %v1607_v52  ;;  %v1892_v27 = vadd.f32 %v1860_v49, %v1668_v42  ;;  %v1829_v57 = vmul.f32 0.1, %v2387_v14 }
 0x31f   : > { %v1707_v5 = vmul.f32 10.0, %v3601_v30  ;;  %v3610_v25 = vadd.f32 %v3470_v17, %v1605_v21  ;;  %v1830_v45 = vmul.f32 0.1, %v2388_v18  ;;  %v1671_v31 = vmax.f32 %v3579_v2, 0.0 }
 0x320   : > { %v1767_v0 = vmul.f32 1.442695, %v1709_v9  ;;  %v1710_v62 = vmul.f32 10.0, %v3606_v60  ;;  %v1915_v6 = vpack.c.bf16 %v1892_v27, %v1891_v36  ;;  %v1861_v53 = vmin.f32 %v1829_v57, 0.0 }
 0x321   : > { %v1763_v24 = vmul.f32 1.442695, %v1707_v5  ;;  %v1708_v16 = vmul.f32 10.0, %v3610_v25  ;;  %v2657_v51 = vpop.f32.mrb[76].mxu1  ;;  %v1862_v22 = vmin.f32 %v1830_v45, 0.0  ;;  %v1672_v9 = vmax.f32 %v3588_v56, 0.0 }
 0x322   : > { %2862 = vpow2.f32 %v1767_v0  ;;  %v1769_v8 = vmul.f32 1.442695, %v1710_v62  ;;  %v1610_v58 = vadd.f32 %v2657_v51, %v3195_v54  ;;  %v1565_v4 = vpop.f32.mrb[77].mxu1  ;;  %2691 = vmatprep.mubr.bf16.mxu0 %v1915_v6  ;;  %v1669_v54 = vmax.f32 %v3551_v32, 0.0 }
 0x323   : > { %2864 = vpow2.f32 %v1763_v24  ;;  %v1765_v34 = vmul.f32 1.442695, %v1708_v16  ;;  %v1608_v44 = vadd.f32 %v1565_v4, %v3809_v20  ;;  %v2658_v43 = vpop.f32.mrb[78].mxu1  ;;  %v1894_v32 = vadd.f32 %v1862_v22, %v1670_v33 }
 0x324   : > { %v2855_v55 = vpop.eup %2854  ;;  %2866 = vpow2.f32 %v1769_v8  ;;  %v3617_v12 = vadd.f32 %v3470_v17, %v1610_v58  ;;  %v1611_v48 = vadd.f32 %v2658_v43, %v3810_v61  ;;  %v1568_v39 = vpop.f32.mrb[79].mxu1  ;;  %v1893_v63 = vadd.f32 %v1861_v53, %v1669_v54 }
 0x325   : > { %v2857_v1 = vpop.eup %2856  ;;  %2868 = vpow2.f32 %v1765_v34  ;;  %v3623_v59 = vadd.f32 %v3470_v17, %v1608_v44  ;;  %v2391_v38 = vadd.f32 -1.0, %v2855_v55  ;;  %v1609_v13 = vadd.f32 %v1568_v39, %v3811_v35 }
 0x326   : > { %v2859_v19 = vpop.eup %2858  ;;  %v2389_v23 = vadd.f32 -1.0, %v2857_v1  ;;  %v1713_v14 = vmul.f32 10.0, %v3617_v12  ;;  %v3627_v42 = vadd.f32 %v3470_v17, %v1611_v48  ;;  %v1916_v28 = vpack.c.bf16 %v1894_v32, %v1893_v63 }
 0x327   : > { %v2861_v26 = vpop.eup %2860  ;;  %v2392_v37 = vadd.f32 -1.0, %v2859_v19  ;;  %v1711_v10 = vmul.f32 10.0, %v3623_v59  ;;  %v1833_v11 = vmul.f32 0.1, %v2391_v38  ;;  %v3634_v21 = vadd.f32 %v3470_v17, %v1609_v13 }
 0x328   : > { %v2390_v15 = vadd.f32 -1.0, %v2861_v26  ;;  %v1775_v3 = vmul.f32 1.442695, %v1713_v14  ;;  %v1714_v50 = vmul.f32 10.0, %v3627_v42  ;;  %v1831_v47 = vmul.f32 0.1, %v2389_v23  ;;  %2692 = vmatmul.mubr.bf16.gmra.mrb[64].mxu0 %v1916_v28 }
 0x329   : > { %v1771_v29 = vmul.f32 1.442695, %v1711_v10  ;;  %v1834_v2 = vmul.f32 0.1, %v2392_v37  ;;  %v1865_v36 = vmin.f32 %v1833_v11, 0.0  ;;  %v1673_v0 = vmax.f32 %v3575_v46, 0.0 }
 0x32a   : > { %2870 = vpow2.f32 %v1775_v3  ;;  %v1777_v52 = vmul.f32 1.442695, %v1714_v50  ;;  %v1832_v40 = vmul.f32 0.1, %v2390_v15  ;;  %v1863_v49 = vmin.f32 %v1831_v47, 0.0 }
 0x32b   : > { %2872 = vpow2.f32 %v1771_v29  ;;  %v1674_v62 = vmax.f32 %v3584_v7, 0.0  ;;  %v1712_v24 = vmul.f32 10.0, %v3634_v21  ;;  %v1866_v8 = vmin.f32 %v1834_v2, 0.0 }
 0x32c   : > { %v2863_v18 = vpop.eup %2862  ;;  %2874 = vpow2.f32 %v1777_v52  ;;  %v1864_v5 = vmin.f32 %v1832_v40, 0.0  ;;  %v1895_v17 = vadd.f32 %v1863_v49, %v1671_v31  ;;  %v1897_v56 = vadd.f32 %v1865_v36, %v1673_v0 }
 0x32d   : > { %v2865_v27 = vpop.eup %2864  ;;  %v2395_v57 = vadd.f32 -1.0, %v2863_v18  ;;  %v1773_v45 = vmul.f32 1.442695, %v1712_v24  ;;  %v1898_v43 = vadd.f32 %v1866_v8, %v1674_v62  ;;  %v1677_v22 = vmax.f32 %v3597_v41, 0.0  ;;  %v2878_v24 = vld [vmem:[%s3004_s27 + $0x10] sm:$0xff] }
 0x32e   : > { %v2867_v16 = vpop.eup %2866  ;;  %v2393_v51 = vadd.f32 -1.0, %v2865_v27  ;;  %v1896_v6 = vadd.f32 %v1864_v5, %v1672_v9  ;;  %v1678_v39 = vmax.f32 %v3606_v60, 0.0  ;;  %v1675_v33 = vmax.f32 %v3601_v30, 0.0 }
 0x32f   : > { %v2869_v58 = vpop.eup %2868  ;;  %v2396_v4 = vadd.f32 -1.0, %v2867_v16  ;;  %v1837_v34 = vmul.f32 0.1, %v2395_v57  ;;  %2876 = vpow2.f32 %v1773_v45  ;;  %v1918_v55 = vpack.c.bf16 %v1898_v43, %v1897_v56  ;;  %v2881_v56 = vld [vmem:[%s3004_s27 + $0x8] sm:$0xff] }
 0x330   : > { %v2394_v20 = vadd.f32 -1.0, %v2869_v58  ;;  %v1917_v44 = vpack.c.bf16 %v1896_v6, %v1895_v17  ;;  %v1835_v53 = vmul.f32 0.1, %v2393_v51  ;;  %v1676_v19 = vmax.f32 %v3610_v25, 0.0  ;;  %v2879_v6 = vld [vmem:[%s3004_s27] sm:$0xff] }
 0x331   : > { %v1838_v46 = vmul.f32 0.1, %v2396_v4  ;;  %v1869_v7 = vmin.f32 %v1837_v34, 0.0  ;;  %v1681_v25 = vmax.f32 %v3617_v12, 0.0  ;;  %v1682_v35 = vmax.f32 %v3627_v42, 0.0  ;;  %v2880_v4 = vld [vmem:[%s3004_s27 + $0x18] sm:$0xff] }
 0x332   : > { %2695 = vmatprep.mubr.bf16.mxu0 %v1917_v44  ;;  %v1836_v61 = vmul.f32 0.1, %v2394_v20  ;;  %v1867_v48 = vmin.f32 %v1835_v53, 0.0  ;;  %v1679_v18 = vmax.f32 %v3623_v59, 0.0  ;;  %v1680_v9 = vmax.f32 %v3634_v21, 0.0 }
 0x333   : > { %v1870_v1 = vmin.f32 %v1838_v46, 0.0  ;;  %2696 = vmatmul.mubr.bf16.gmra.mrb[68].mxu0 %v1918_v55  ;;  %v1901_v26 = vadd.f32 %v1869_v7, %v1677_v22  ;;  %v3651_v42 = vld [vmem:[%s3800_s9] ss:$0 sm:$0xff]  ;;  %v2882_v7 = vld [vmem:[%s3004_s27 + $0x30] sm:$0xff] }
 0x334   : > { %v2871_v54 = vpop.eup %2870  ;;  %v1868_v38 = vmin.f32 %v1836_v61, 0.0  ;;  %v1899_v32 = vadd.f32 %v1867_v48, %v1675_v33  ;;  %v2883_v22 = vld [vmem:[%s3004_s27 + $0x20] sm:$0xff] }
 0x335   : > { %v2873_v23 = vpop.eup %2872  ;;  %v2399_v14 = vadd.f32 -1.0, %v2871_v54  ;;  %v1902_v37 = vadd.f32 %v1870_v1, %v1678_v39  ;;  %v2884_v54 = vld [vmem:[%s3004_s27 + $0x38] sm:$0xff] }
 0x336   : > { %v2875_v10 = vpop.eup %2874  ;;  %v2397_v63 = vadd.f32 -1.0, %v2873_v23  ;;  %v1900_v31 = vadd.f32 %v1868_v38, %v1676_v19  ;;  %v2885_v19 = vld [vmem:[%s3004_s27 + $0x28] sm:$0xff] }
 0x337   : > { %v2400_v15 = vadd.f32 -1.0, %v2875_v10  ;;  %v1920_v41 = vpack.c.bf16 %v1902_v37, %v1901_v26  ;;  %v1841_v3 = vmul.f32 0.1, %v2399_v14 }
 0x338   : > { %v1919_v60 = vpack.c.bf16 %v1900_v31, %v1899_v32  ;;  %v1839_v30 = vmul.f32 0.1, %v2397_v63  ;;  %v2886_v63 = vld [vmem:[%s3004_s27 + $0x50] sm:$0xff] }
 0x339   : > { %v1842_v50 = vmul.f32 0.1, %v2400_v15  ;;  %v1873_v29 = vmin.f32 %v1841_v3, 0.0  ;;  %v2877_v28 = vpop.eup %2876 }
 0x33a   : > { %2699 = vmatprep.mubr.bf16.mxu0 %v1919_v60  ;;  %v2398_v47 = vadd.f32 -1.0, %v2877_v28  ;;  %v1871_v49 = vmin.f32 %v1839_v30, 0.0  ;;  %v2889_v30 = vld [vmem:[%s3004_s27 + $0x48] sm:$0xff] }
 0x33b   : > { %v1874_v13 = vmin.f32 %v1842_v50, 0.0  ;;  %2700 = vmatmul.mubr.bf16.gmra.mrb[72].mxu0 %v1920_v41  ;;  %v1905_v52 = vadd.f32 %v1873_v29, %v1681_v25  ;;  %v2887_v41 = vld [vmem:[%s3004_s27 + $0x40] sm:$0xff]  ;;  %v2888_v50 = vld [vmem:[%s3004_s27 + $0x58] sm:$0xff] }
 0x33c   : > { %v1840_v11 = vmul.f32 0.1, %v2398_v47  ;;  %v1903_v36 = vadd.f32 %v1871_v49, %v1679_v18  ;;  %v2891_v18 = vld [vmem:[%s3004_s27 + $0x60] sm:$0xff] }
 0x33d   : > { %v1906_v40 = vadd.f32 %v1874_v13, %v1682_v35 }
 0x33e   : > { %v1872_v5 = vmin.f32 %v1840_v11, 0.0 }
 0x33f   : > { %v1922_v2 = vpack.c.bf16 %v1906_v40, %v1905_v52  ;;  %v2890_v40 = vld [vmem:[%s3004_s27 + $0x70] sm:$0xff] }
 0x340   : > { %v1904_v12 = vadd.f32 %v1872_v5, %v1680_v9 }
 0x342   : > { %v1921_v27 = vpack.c.bf16 %v1904_v12, %v1903_v36  ;;  %v2892_v36 = vld [vmem:[%s3004_s27 + $0x78] sm:$0xff] }
 0x344   : > { %2703 = vmatprep.mubr.bf16.mxu0 %v1921_v27  ;;  %v2893_v27 = vld [vmem:[%s3004_s27 + $0x68] sm:$0xff] }
 0x345   : > { %2704 = vmatmul.mubr.bf16.gmra.mrb[76].mxu0 %v1922_v2 }
 0x3b6   : > { %v2677_v0 = vpop.f32.mrb[48].mxu0 }
 0x3b7   : > { %v2037_v62 = vadd.f32 %v2677_v0, %v3651_v42  ;;  %v2028_v59 = vpop.f32.mrb[49].mxu0 }
 0x3b8   : > { %v2029_v21 = vadd.f32 %v3651_v42, %v2028_v59  ;;  %v2678_v57 = vpop.f32.mrb[50].mxu0 }
 0x3b9   : > { %v2157_v16 = vadd.f32 %v2878_v24, %v2037_v62  ;;  %v2040_v51 = vadd.f32 %v2678_v57, %v3651_v42  ;;  %v2031_v17 = vpop.f32.mrb[51].mxu0 }
 0x3ba   : > { %v2155_v8 = vadd.f32 %v2879_v6, %v2029_v21  ;;  %v2032_v58 = vadd.f32 %v3651_v42, %v2031_v17 }
 0x3bb   : > { %2189 = vst.msk [vmem:[%s3659_s25 + $0x10] sm:$0xff] %vm522_vm0, %v2157_v16  ;;  %v2158_v45 = vadd.f32 %v2880_v4, %v2040_v51  ;;  %v2894_v16 = vld [vmem:[%s3004_s27 + $0x90] sm:$0xff] }
 0x3bc   : > { %2187 = vst.msk [vmem:[%s3659_s25] sm:$0xff] %vm522_vm0, %v2155_v8  ;;  %v2156_v34 = vadd.f32 %v2881_v56, %v2032_v58  ;;  %v2895_v8 = vld [vmem:[%s3004_s27 + $0x80] sm:$0xff] }
 0x3bd   : > { %2190 = vst.msk [vmem:[%s3659_s25 + $0x18] sm:$0xff] %vm522_vm0, %v2158_v45  ;;  %v2896_v45 = vld [vmem:[%s3004_s27 + $0x98] sm:$0xff] }
 0x3be   : > { %2188 = vst.msk [vmem:[%s3659_s25 + $0x8] sm:$0xff] %vm522_vm0, %v2156_v34  ;;  %v2897_v34 = vld [vmem:[%s3004_s27 + $0x88] sm:$0xff] }
 0x3c6   : > { %v2681_v20 = vpop.f32.mrb[52].mxu0 }
 0x3c7   : > { %v2053_v44 = vadd.f32 %v2681_v20, %v3651_v42  ;;  %v2044_v43 = vpop.f32.mrb[53].mxu0 }
 0x3c8   : > { %v2045_v53 = vadd.f32 %v3651_v42, %v2044_v43  ;;  %v2682_v46 = vpop.f32.mrb[54].mxu0 }
 0x3c9   : > { %v2161_v55 = vadd.f32 %v2882_v7, %v2053_v44  ;;  %v2056_v61 = vadd.f32 %v2682_v46, %v3651_v42  ;;  %v2047_v48 = vpop.f32.mrb[55].mxu0 }
 0x3ca   : > { %v2159_v39 = vadd.f32 %v2883_v22, %v2045_v53  ;;  %v2048_v1 = vadd.f32 %v3651_v42, %v2047_v48 }
 0x3cb   : > { %2193 = vst.msk [vmem:[%s3659_s25 + $0x30] sm:$0xff] %vm522_vm0, %v2161_v55  ;;  %v2162_v33 = vadd.f32 %v2884_v54, %v2056_v61  ;;  %v2898_v55 = vld [vmem:[%s3004_s27 + $0xb0] sm:$0xff] }
 0x3cc   : > { %2191 = vst.msk [vmem:[%s3659_s25 + $0x20] sm:$0xff] %vm522_vm0, %v2159_v39  ;;  %v2160_v38 = vadd.f32 %v2885_v19, %v2048_v1  ;;  %v2899_v39 = vld [vmem:[%s3004_s27 + $0xa0] sm:$0xff] }
 0x3cd   : > { %2194 = vst.msk [vmem:[%s3659_s25 + $0x38] sm:$0xff] %vm522_vm0, %v2162_v33  ;;  %v2900_v33 = vld [vmem:[%s3004_s27 + $0xb8] sm:$0xff] }
 0x3ce   : > { %2192 = vst.msk [vmem:[%s3659_s25 + $0x28] sm:$0xff] %vm522_vm0, %v2160_v38  ;;  %v2901_v38 = vld [vmem:[%s3004_s27 + $0xa8] sm:$0xff] }
 0x3d6   : > { %v2685_v23 = vpop.f32.mrb[56].mxu0 }
 0x3d7   : > { %v2069_v14 = vadd.f32 %v2685_v23, %v3651_v42  ;;  %v2060_v26 = vpop.f32.mrb[57].mxu0 }
 0x3d8   : > { %v2061_v37 = vadd.f32 %v3651_v42, %v2060_v26  ;;  %v2686_v10 = vpop.f32.mrb[58].mxu0 }
 0x3d9   : > { %v2165_v32 = vadd.f32 %v2886_v63, %v2069_v14  ;;  %v2072_v31 = vadd.f32 %v2686_v10, %v3651_v42  ;;  %v2063_v15 = vpop.f32.mrb[59].mxu0 }
 0x3da   : > { %v2163_v3 = vadd.f32 %v2887_v41, %v2061_v37  ;;  %v2064_v60 = vadd.f32 %v3651_v42, %v2063_v15 }
 0x3db   : > { %2197 = vst.msk [vmem:[%s3659_s25 + $0x50] sm:$0xff] %vm522_vm0, %v2165_v32  ;;  %v2166_v29 = vadd.f32 %v2888_v50, %v2072_v31  ;;  %v2902_v32 = vld [vmem:[%s3004_s27 + $0xd0] sm:$0xff] }
 0x3dc   : > { %2195 = vst.msk [vmem:[%s3659_s25 + $0x40] sm:$0xff] %vm522_vm0, %v2163_v3  ;;  %v2164_v28 = vadd.f32 %v2889_v30, %v2064_v60  ;;  %v2903_v3 = vld [vmem:[%s3004_s27 + $0xc0] sm:$0xff] }
 0x3dd   : > { %2198 = vst.msk [vmem:[%s3659_s25 + $0x58] sm:$0xff] %vm522_vm0, %v2166_v29  ;;  %v2904_v29 = vld [vmem:[%s3004_s27 + $0xd8] sm:$0xff] }
 0x3de   : > { %2196 = vst.msk [vmem:[%s3659_s25 + $0x48] sm:$0xff] %vm522_vm0, %v2164_v28  ;;  %v2905_v28 = vld [vmem:[%s3004_s27 + $0xc8] sm:$0xff] }
 0x3e6   : > { %v2689_v25 = vpop.f32.mrb[60].mxu0 }
 0x3e7   : > { %v2085_v35 = vadd.f32 %v2689_v25, %v3651_v42  ;;  %v2076_v13 = vpop.f32.mrb[61].mxu0 }
 0x3e8   : > { %v2077_v47 = vadd.f32 %v3651_v42, %v2076_v13  ;;  %v2690_v52 = vpop.f32.mrb[62].mxu0 }
 0x3e9   : > { %v2169_v11 = vadd.f32 %v2890_v40, %v2085_v35  ;;  %v2088_v49 = vadd.f32 %v2690_v52, %v3651_v42  ;;  %v2079_v2 = vpop.f32.mrb[63].mxu0 }
 0x3ea   : > { %v2167_v9 = vadd.f32 %v2891_v18, %v2077_v47  ;;  %v2080_v5 = vadd.f32 %v3651_v42, %v2079_v2 }
 0x3eb   : > { %2201 = vst.msk [vmem:[%s3659_s25 + $0x70] sm:$0xff] %vm522_vm0, %v2169_v11  ;;  %v2170_v12 = vadd.f32 %v2892_v36, %v2088_v49  ;;  %v2906_v11 = vld [vmem:[%s3004_s27 + $0xf0] sm:$0xff] }
 0x3ec   : > { %2199 = vst.msk [vmem:[%s3659_s25 + $0x60] sm:$0xff] %vm522_vm0, %v2167_v9  ;;  %v2168_v0 = vadd.f32 %v2893_v27, %v2080_v5  ;;  %v2907_v9 = vld [vmem:[%s3004_s27 + $0xe0] sm:$0xff] }
 0x3ed   : > { %2202 = vst.msk [vmem:[%s3659_s25 + $0x78] sm:$0xff] %vm522_vm0, %v2170_v12  ;;  %v2908_v12 = vld [vmem:[%s3004_s27 + $0xf8] sm:$0xff] }
 0x3ee   : > { %2200 = vst.msk [vmem:[%s3659_s25 + $0x68] sm:$0xff] %vm522_vm0, %v2168_v0  ;;  %v2909_v0 = vld [vmem:[%s3004_s27 + $0xe8] sm:$0xff] }
 0x3fb   : > { %v2693_v62 = vpop.f32.mrb[64].mxu0 }
 0x3fc   : > { %v2101_v59 = vadd.f32 %v2693_v62, %v3651_v42  ;;  %v2092_v21 = vpop.f32.mrb[65].mxu0 }
 0x3fd   : > { %v2093_v57 = vadd.f32 %v3651_v42, %v2092_v21  ;;  %v2694_v24 = vpop.f32.mrb[66].mxu0 }
 0x3fe   : > { %v2173_v51 = vadd.f32 %v2894_v16, %v2101_v59  ;;  %v2104_v17 = vadd.f32 %v2694_v24, %v3651_v42  ;;  %v2095_v6 = vpop.f32.mrb[67].mxu0 }
 0x3ff   : > { %v2171_v58 = vadd.f32 %v2895_v8, %v2093_v57  ;;  %v2096_v4 = vadd.f32 %v3651_v42, %v2095_v6 }
 0x400   : > { %2205 = vst.msk [vmem:[%s3659_s25 + $0x90] sm:$0xff] %vm522_vm0, %v2173_v51  ;;  %v2174_v56 = vadd.f32 %v2896_v45, %v2104_v17 }
 0x401   : > { %2203 = vst.msk [vmem:[%s3659_s25 + $0x80] sm:$0xff] %vm522_vm0, %v2171_v58  ;;  %v2172_v20 = vadd.f32 %v2897_v34, %v2096_v4 }
 0x402   : > { %2206 = vst.msk [vmem:[%s3659_s25 + $0x98] sm:$0xff] %vm522_vm0, %v2174_v56 }
 0x403   : > { %2204 = vst.msk [vmem:[%s3659_s25 + $0x88] sm:$0xff] %vm522_vm0, %v2172_v20 }
 0x406   : > { %v2697_v44 = vpop.f32.mrb[68].mxu0 }
 0x407   : > { %v2117_v43 = vadd.f32 %v2697_v44, %v3651_v42  ;;  %v2108_v53 = vpop.f32.mrb[69].mxu0 }
 0x408   : > { %v2109_v46 = vadd.f32 %v3651_v42, %v2108_v53  ;;  %v2698_v7 = vpop.f32.mrb[70].mxu0 }
 0x409   : > { %v2177_v61 = vadd.f32 %v2898_v55, %v2117_v43  ;;  %v2120_v48 = vadd.f32 %v2698_v7, %v3651_v42  ;;  %v2111_v22 = vpop.f32.mrb[71].mxu0 }
 0x40a   : > { %v2175_v1 = vadd.f32 %v2899_v39, %v2109_v46  ;;  %v2112_v54 = vadd.f32 %v3651_v42, %v2111_v22 }
 0x40b   : > { %2209 = vst.msk [vmem:[%s3659_s25 + $0xb0] sm:$0xff] %vm522_vm0, %v2177_v61  ;;  %v2178_v19 = vadd.f32 %v2900_v33, %v2120_v48 }
 0x40c   : > { %2207 = vst.msk [vmem:[%s3659_s25 + $0xa0] sm:$0xff] %vm522_vm0, %v2175_v1  ;;  %v2176_v23 = vadd.f32 %v2901_v38, %v2112_v54 }
 0x40d   : > { %2210 = vst.msk [vmem:[%s3659_s25 + $0xb8] sm:$0xff] %vm522_vm0, %v2178_v19 }
 0x40e   : > { %2208 = vst.msk [vmem:[%s3659_s25 + $0xa8] sm:$0xff] %vm522_vm0, %v2176_v23  ;;  %v2701_v14 = vpop.f32.mrb[72].mxu0 }
 0x40f   : > { %v2133_v26 = vadd.f32 %v2701_v14, %v3651_v42  ;;  %v2124_v37 = vpop.f32.mrb[73].mxu0 }
 0x410   : > { %v2125_v10 = vadd.f32 %v3651_v42, %v2124_v37  ;;  %v2702_v63 = vpop.f32.mrb[74].mxu0 }
 0x411   : > { %v2181_v31 = vadd.f32 %v2902_v32, %v2133_v26  ;;  %v2136_v15 = vadd.f32 %v2702_v63, %v3651_v42  ;;  %v2127_v41 = vpop.f32.mrb[75].mxu0 }
 0x412   : > { %v2179_v60 = vadd.f32 %v2903_v3, %v2125_v10  ;;  %v2128_v50 = vadd.f32 %v3651_v42, %v2127_v41 }
 0x413   : > { %2213 = vst.msk [vmem:[%s3659_s25 + $0xd0] sm:$0xff] %vm522_vm0, %v2181_v31  ;;  %v2182_v30 = vadd.f32 %v2904_v29, %v2136_v15 }
 0x414   : > { %2211 = vst.msk [vmem:[%s3659_s25 + $0xc0] sm:$0xff] %vm522_vm0, %v2179_v60  ;;  %v2180_v25 = vadd.f32 %v2905_v28, %v2128_v50 }
 0x415   : > { %2214 = vst.msk [vmem:[%s3659_s25 + $0xd8] sm:$0xff] %vm522_vm0, %v2182_v30 }
 0x416   : > { %2212 = vst.msk [vmem:[%s3659_s25 + $0xc8] sm:$0xff] %vm522_vm0, %v2180_v25 }
 0x418   : > { %v2705_v35 = vpop.f32.mrb[76].mxu0 }
 0x419   : > { %v2149_v13 = vadd.f32 %v2705_v35, %v3651_v42  ;;  %v2140_v47 = vpop.f32.mrb[77].mxu0 }
 0x41a   : > { %v2141_v52 = vadd.f32 %v3651_v42, %v2140_v47  ;;  %v2706_v40 = vpop.f32.mrb[78].mxu0 }
 0x41b   : > { %v2185_v49 = vadd.f32 %v2906_v11, %v2149_v13  ;;  %v2152_v2 = vadd.f32 %v2706_v40, %v3651_v42  ;;  %v2143_v18 = vpop.f32.mrb[79].mxu0 }
 0x41c   : > { %v2183_v5 = vadd.f32 %v2907_v9, %v2141_v52  ;;  %v2144_v36 = vadd.f32 %v3651_v42, %v2143_v18 }
 0x41d   : > { %2217 = vst.msk [vmem:[%s3659_s25 + $0xf0] sm:$0xff] %vm522_vm0, %v2185_v49  ;;  %v2186_v27 = vadd.f32 %v2908_v12, %v2152_v2 }
 0x41e   : > { %2215 = vst.msk [vmem:[%s3659_s25 + $0xe0] sm:$0xff] %vm522_vm0, %v2183_v5  ;;  %v2184_v62 = vadd.f32 %v2909_v0, %v2144_v36 }
 0x41f   : > { %2218 = vst.msk [vmem:[%s3659_s25 + $0xf8] sm:$0xff] %vm522_vm0, %v2186_v27 }
 0x420   : > { %2216 = vst.msk [vmem:[%s3659_s25 + $0xe8] sm:$0xff] %vm522_vm0, %v2184_v62 }
 0x421 PF: > { %s20_s13 = sadd.s32 1, %s2916_s13  }
 0x422   : > { %p17_p4 = scmp.ge.s32.totalorder %s20_s13, 4  }
 0x424   :  { %19 = sbr.rel (!%p17_p4) target bundleno = 1 (0x1), region = 93 }

</bundles_post_ra>
